<compile_context>
chip_gen: v7x
topology: tpu7x:2x2x1
jax: 0.10.0
libtpu: 0.0.40
codegen_flags: <defaults>
</compile_context>

<pallas_src>
import jax
import jax.numpy as jnp
from jax import lax
from jax.experimental import pallas as pl
from jax.experimental.pallas import tpu as pltpu


def _leaky_relu(x, slope):
    return jnp.where(x >= 0, x, slope * x)


def _vmem():
    return pl.BlockSpec(memory_space=pltpu.MemorySpace.VMEM)


def _batch_norm(x, gamma, beta, eps=1e-5):
    # torch_geometric.nn.BatchNorm (BatchNorm1d over nodes), training-mode
    # (batch) statistics, biased variance, affine.
    mean = jnp.mean(x, axis=0, keepdims=True)
    xc = x - mean
    var = jnp.mean(xc * xc, axis=0, keepdims=True)
    return xc * lax.rsqrt(var + eps) * gamma + beta


# ---------------------------------------------------------------------------
# One RGATConv layer on relation-packed dense data (runs inside the fused
# kernel; everything lives in vregs/VMEM).
#   x        : [N, Fin]      f32
#   maskf    : [N, R*N]      f32 0/1, maskf[i, r*N+j] = 1 iff edge j->i, rel r
#   has_edge : [N, 1]        f32 0/1 (any incoming edge over all relations)
#   w        : [Fin, R*H*C]  bf16, relation-stacked weight
#   qbd/kbd  : [R*H*C, R*H]  f32, block-diagonal q / k attention matrices
#   bias     : [1, Cout]     f32
# ---------------------------------------------------------------------------
def _rgat_layer(x, maskf, has_edge, w, qbd, kbd, bias, *, R, H, C, concat):
    hc = H * C
    # Relation-stacked feature transform: ONE wide MXU matmul (bf16 -> f32).
    xr = jnp.dot(x.astype(jnp.bfloat16), w,
                 preferred_element_type=jnp.float32)                 # [N, R*H*C]
    # Fused q / k projections (block-diagonal): one skinny matmul each.
    qv = jnp.dot(xr, qbd, preferred_element_type=jnp.float32)        # [N, R*H]
    kt = lax.dot_general(kbd, xr, (((0,), (1,)), ((), ())),
                         preferred_element_type=jnp.float32)         # [R*H, N]
    # Relation-packed value matrix, shared by all heads: [R*N, H*C] bf16.
    v_stack = jnp.concatenate(
        [xr[:, r * hc:(r + 1) * hc] for r in range(R)], axis=0
    ).astype(jnp.bfloat16)

    neg = jnp.float32(-1e30)
    out = None
    for h in range(H):
        # Packed additive logits over all relations: [N, R*N].
        lg = jnp.concatenate(
            [qv[:, r * H + h:r * H + h + 1] + kt[r * H + h:r * H + h + 1, :]
             for r in range(R)], axis=1)
        lg = _leaky_relu(lg, 0.2)
        lg = jnp.where(maskf > 0.5, lg, neg)        # single masking mechanism
        # Softmax "across-relation" per target node (f32 throughout).
        mx = jnp.max(lg, axis=1, keepdims=True)
        p = jnp.exp(lg - mx)                        # masked entries underflow to 0
        denom = jnp.sum(p, axis=1, keepdims=True)   # >= 1 for rows with edges
        # EUP approximate reciprocal; has_edge zeroes isolated nodes (their
        # row is all-masked so p == 1 everywhere and must not contribute).
        scale = pl.reciprocal(denom, approx=True) * has_edge          # [N, 1]
        acc = jnp.dot(p.astype(jnp.bfloat16), v_stack[:, h * C:(h + 1) * C],
                      preferred_element_type=jnp.float32)             # [N, C]
        ho = acc * scale
        if concat:
            # Only hit with H == 1 in this model -> no concatenate emitted.
            out = ho if out is None else jnp.concatenate([out, ho], axis=1)
        else:
            out = ho if out is None else out + ho
    if not concat:
        out = out * (1.0 / H)                        # mean over heads
    return out + bias


# ---------------------------------------------------------------------------
# Fully fused kernel: conv_0 -> leaky_relu -> bn_0 -> conv_1 -> leaky_relu ->
# bn_1 -> index_select (one-hot matmul) -> MLP -> sigmoid.  One pallas_call.
# ---------------------------------------------------------------------------
def _make_fused_kernel(R, H0, C0, H1, C1, n_nodes, n_sel):
    def kernel(x_ref, adj_ref, idx_ref,
               w0_ref, q0_ref, k0_ref, b0_ref, g0_ref, be0_ref,
               w1_ref, q1_ref, k1_ref, b1_ref, g1_ref, be1_ref,
               mw1_ref, mb1_ref, mw2_ref, mb2_ref, mw3_ref, mb3_ref,
               h_ref, out_ref):
        # int8 adjacency -> f32 once; reused by both conv layers.
        maskf = adj_ref[...].astype(jnp.float32)                      # [N, R*N]
        has_edge = (jnp.sum(maskf, axis=1, keepdims=True) > 0.0
                    ).astype(jnp.float32)                             # [N, 1]

        h = _rgat_layer(x_ref[...], maskf, has_edge,
                        w0_ref[...], q0_ref[...], k0_ref[...], b0_ref[...],
                        R=R, H=H0, C=C0, concat=False)
        h = _leaky_relu(h, 0.01)                    # fused F.leaky_relu_
        h = _batch_norm(h, g0_ref[...], be0_ref[...])

        h = _rgat_layer(h, maskf, has_edge,
                        w1_ref[...], q1_ref[...], k1_ref[...], b1_ref[...],
                        R=R, H=H1, C=C1, concat=True)
        h = _leaky_relu(h, 0.01)
        h = _batch_norm(h, g1_ref[...], be1_ref[...])                 # [N, C1]

        # torch.index_select fused as a one-hot gather matmul on the MXU
        # (bf16 selection is exactly as precise as the bf16 cast the first
        # MLP matmul performs anyway).
        iota = lax.broadcasted_iota(jnp.int32, (n_sel, n_nodes), 1)   # [M, N]
        sel = jnp.where(iota == idx_ref[...], 1.0, 0.0
                        ).astype(jnp.bfloat16)                        # [M, N]
        hs = jnp.dot(sel, h.astype(jnp.bfloat16),
                     preferred_element_type=jnp.float32)              # [M, C1]

        # MLP 64->32->16->5 with LeakyReLU between layers.
        hs = jnp.dot(hs.astype(jnp.bfloat16), mw1_ref[...],
                     preferred_element_type=jnp.float32) + mb1_ref[...]
        hs = _leaky_relu(hs, 0.01)
        hs = jnp.dot(hs.astype(jnp.bfloat16), mw2_ref[...],
                     preferred_element_type=jnp.float32) + mb2_ref[...]
        hs = _leaky_relu(hs, 0.01)
        hs = jnp.dot(hs.astype(jnp.bfloat16), mw3_ref[...],
                     preferred_element_type=jnp.float32) + mb3_ref[...]
        h_ref[...] = hs
        # sigmoid via EUP exp + approximate reciprocal.
        out_ref[...] = pl.reciprocal(1.0 + jnp.exp(-hs), approx=True)
    return kernel


def _cost_estimate(n, m, f_in, hid, R):
    flops, trans = 0, 0
    for f, H, C in ((f_in, 2, hid), (hid, 1, hid)):
        flops += 2 * n * f * R * H * C          # stacked projection
        flops += 4 * n * (R * H * C) * (R * H)  # q / k projections
        flops += 2 * H * n * (R * n) * C        # attention aggregation
        flops += 8 * H * n * R * n              # softmax / mask elementwise
        trans += H * n * R * n                  # exp
    flops += 2 * m * n * hid                    # one-hot gather matmul
    flops += 2 * m * (hid * 32 + 32 * 16 + 16 * 5)  # MLP
    trans += m * 5                              # sigmoid exp
    bytes_accessed = (4 * n * (f_in + hid) + n * R * n + 4 * m * (1 + 2 * 5)
                      + 4 * (f_in * R * 2 * hid + hid * R * hid)
                      + 2 * (hid * 32 + 32 * 16 + 16 * 5))
    return pl.CostEstimate(flops=int(flops), transcendentals=int(trans),
                           bytes_accessed=int(bytes_accessed))


# ---------------------------------------------------------------------------
# Full forward (single pallas_call).
# ---------------------------------------------------------------------------
def my_out_rgat_forward(params, x, adj_packed, idx, *, hid=64,
                        heads0=2, heads1=1):
    n, f_in = x.shape
    r = adj_packed.shape[1] // n
    m = idx.shape[0]
    n_out = params["mw3"].shape[1]
    # TODO(synk): idx2index() semantics unknown; `idx` is used directly as
    # integer node indices for torch.index_select.
    idx2d = idx.astype(jnp.int32).reshape(m, 1)

    kernel = _make_fused_kernel(R=r, H0=heads0, C0=hid, H1=heads1, C1=hid,
                                n_nodes=n, n_sel=m)
    args = (x, adj_packed, idx2d,
            p_ := params["w0"], params["q0bd"], params["k0bd"], params["b0"],
            params["bn0_g"], params["bn0_b"],
            params["w1"], params["q1bd"], params["k1bd"], params["b1"],
            params["bn1_g"], params["bn1_b"],
            params["mw1"], params["mb1"], params["mw2"], params["mb2"],
            params["mw3"], params["mb3"])
    return pl.pallas_call(
        kernel,
        out_shape=(jax.ShapeDtypeStruct((m, n_out), jnp.float32),
                   jax.ShapeDtypeStruct((m, n_out), jnp.float32)),
        in_specs=[_vmem() for _ in args],
        out_specs=(_vmem(), _vmem()),
        compiler_params=pltpu.CompilerParams(vmem_limit_bytes=32 * 1024 * 1024),
        cost_estimate=_cost_estimate(n, m, f_in, hid, r),
    )(*args)


# ---------------------------------------------------------------------------
# Parameter packing helpers (glue, runs once).
# ---------------------------------------------------------------------------
def _block_diag(blocks):
    rows = sum(b.shape[0] for b in blocks)
    cols = sum(b.shape[1] for b in blocks)
    out = jnp.zeros((rows, cols), blocks[0].dtype)
    r = c = 0
    for b in blocks:
        out = out.at[r:r + b.shape[0], c:c + b.shape[1]].set(b)
        r += b.shape[0]
        c += b.shape[1]
    return out


if __name__ == "__main__":
    N, F_IN, HID, R = 16, 128, 64, 2

    key = jax.random.PRNGKey(0)
    keys = jax.random.split(key, 12)

    def init(k, shape, fan_in):
        return jax.random.uniform(k, shape, jnp.float32, -1.0, 1.0) / jnp.sqrt(
            jnp.float32(fan_in))

    # Raw per-relation parameters (PyG layout).
    w0 = init(keys[1], (R, F_IN, 2 * HID), F_IN)      # conv_0 weight [R,128,128]
    q0 = init(keys[2], (2 * HID, 2), 2 * HID)         # [H*C, H], H=2
    k0 = init(keys[3], (2 * HID, 2), 2 * HID)
    w1 = init(keys[4], (R, HID, HID), HID)            # conv_1 weight [R,64,64]
    q1 = init(keys[5], (HID, 1), HID)                 # [H*C, H], H=1
    k1 = init(keys[6], (HID, 1), HID)

    params = dict(
        # conv_0: relation-stacked bf16 weight + block-diagonal f32 q/k.
        w0=jnp.transpose(w0, (1, 0, 2)).reshape(F_IN, R * 2 * HID
                                                ).astype(jnp.bfloat16),
        q0bd=_block_diag([q0] * R),
        k0bd=_block_diag([k0] * R),
        b0=jnp.zeros((1, HID), jnp.float32),
        # conv_1.
        w1=jnp.transpose(w1, (1, 0, 2)).reshape(HID, R * HID
                                                ).astype(jnp.bfloat16),
        q1bd=_block_diag([q1] * R),
        k1bd=_block_diag([k1] * R),
        b1=jnp.zeros((1, HID), jnp.float32),
        # BatchNorm(64) x2 (affine init: weight=1, bias=0).
        bn0_g=jnp.ones((1, HID), jnp.float32),
        bn0_b=jnp.zeros((1, HID), jnp.float32),
        bn1_g=jnp.ones((1, HID), jnp.float32),
        bn1_b=jnp.zeros((1, HID), jnp.float32),
        # MLP (bf16 weights, f32 biases).
        mw1=init(keys[7], (HID, 32), HID).astype(jnp.bfloat16),
        mb1=jnp.zeros((1, 32), jnp.float32),
        mw2=init(keys[8], (32, 16), 32).astype(jnp.bfloat16),
        mb2=jnp.zeros((1, 16), jnp.float32),
        mw3=init(keys[9], (16, 5), 16).astype(jnp.bfloat16),
        mb3=jnp.zeros((1, 5), jnp.float32),
    )

    # Node features and a deterministic multigraph (ring + skip edges).
    x = jax.random.normal(keys[0], (N, F_IN), dtype=jnp.float32)
    src = jnp.concatenate([jnp.arange(N), jnp.arange(N)])
    dst = jnp.concatenate([(jnp.arange(N) + 1) % N, (jnp.arange(N) + 3) % N])
    edge_type = jnp.concatenate([jnp.arange(N) % 2,
                                 (jnp.arange(N) + 1) % 2]).astype(jnp.int32)
    # Relation-packed int8 adjacency mask: adj_packed[dst, r*N + src] = 1.
    # TODO(synk): duplicate (src,dst,rel) edges collapse to a single 1 here,
    # while PyG's edge-level softmax would count each copy.
    adj_dense = jnp.zeros((R, N, N), jnp.float32).at[
        edge_type, dst.astype(jnp.int32), src.astype(jnp.int32)].set(1.0)
    adj_packed = jnp.transpose(adj_dense, (1, 0, 2)).reshape(N, R * N
                                                             ).astype(jnp.int8)

    idx = jnp.arange(0, N, 2, dtype=jnp.int32)        # 8 readout nodes

    h_out, out = my_out_rgat_forward(params, x, adj_packed, idx)
    jax.block_until_ready((h_out, out))
    assert h_out.shape == (idx.shape[0], 5) and out.shape == (idx.shape[0], 5)
    assert bool(jnp.all(jnp.isfinite(h_out))) and bool(jnp.all(jnp.isfinite(out)))
    print("KERNEL_OK")
</pallas_src>

<mosaic_0001>
module attributes {stable_mosaic.version = 11 : i64} {
  func.func @kernel(%arg0: memref<16x128xf32, #tpu.memory_space<vmem>>, %arg1: memref<16x32xi8, #tpu.memory_space<vmem>>, %arg2: memref<8x1xi32, #tpu.memory_space<vmem>>, %arg3: memref<128x256xbf16, #tpu.memory_space<vmem>>, %arg4: memref<256x4xf32, #tpu.memory_space<vmem>>, %arg5: memref<256x4xf32, #tpu.memory_space<vmem>>, %arg6: memref<1x64xf32, #tpu.memory_space<vmem>>, %arg7: memref<1x64xf32, #tpu.memory_space<vmem>>, %arg8: memref<1x64xf32, #tpu.memory_space<vmem>>, %arg9: memref<64x128xbf16, #tpu.memory_space<vmem>>, %arg10: memref<128x2xf32, #tpu.memory_space<vmem>>, %arg11: memref<128x2xf32, #tpu.memory_space<vmem>>, %arg12: memref<1x64xf32, #tpu.memory_space<vmem>>, %arg13: memref<1x64xf32, #tpu.memory_space<vmem>>, %arg14: memref<1x64xf32, #tpu.memory_space<vmem>>, %arg15: memref<64x32xbf16, #tpu.memory_space<vmem>>, %arg16: memref<1x32xf32, #tpu.memory_space<vmem>>, %arg17: memref<32x16xbf16, #tpu.memory_space<vmem>>, %arg18: memref<1x16xf32, #tpu.memory_space<vmem>>, %arg19: memref<16x5xbf16, #tpu.memory_space<vmem>>, %arg20: memref<1x5xf32, #tpu.memory_space<vmem>>, %arg21: memref<8x5xf32, #tpu.memory_space<vmem>>, %arg22: memref<8x5xf32, #tpu.memory_space<vmem>>) attributes {dimension_semantics = [], scalar_prefetch = 0 : i64, scratch_operands = 0 : i64, tpu.core_type = #tpu.core_type<tc>} {
    %c0 = arith.constant 0 : index
    %c0_0 = arith.constant 0 : index
    %0 = vector.load %arg1[%c0, %c0_0] : memref<16x32xi8, #tpu.memory_space<vmem>>, vector<16x32xi8>
    %1 = arith.sitofp %0 : vector<16x32xi8> to vector<16x32xf32>
    %cst = arith.constant dense<0.000000e+00> : vector<16xf32>
    %2 = vector.multi_reduction <add>, %1, %cst [1] : vector<16x32xf32> to vector<16xf32>
    %3 = vector.shape_cast %2 : vector<16xf32> to vector<16x1xf32>
    %cst_1 = arith.constant 0.000000e+00 : f32
    %4 = vector.broadcast %cst_1 : f32 to vector<16x1xf32>
    %5 = arith.cmpf ogt, %3, %4 : vector<16x1xf32>
    %6 = arith.extui %5 : vector<16x1xi1> to vector<16x1xi32>
    %7 = arith.sitofp %6 : vector<16x1xi32> to vector<16x1xf32>
    %c0_2 = arith.constant 0 : index
    %c0_3 = arith.constant 0 : index
    %8 = vector.load %arg0[%c0_2, %c0_3] : memref<16x128xf32, #tpu.memory_space<vmem>>, vector<16x128xf32>
    %c0_4 = arith.constant 0 : index
    %c0_5 = arith.constant 0 : index
    %9 = vector.load %arg3[%c0_4, %c0_5] : memref<128x256xbf16, #tpu.memory_space<vmem>>, vector<128x256xbf16>
    %c0_6 = arith.constant 0 : index
    %c0_7 = arith.constant 0 : index
    %10 = vector.load %arg4[%c0_6, %c0_7] : memref<256x4xf32, #tpu.memory_space<vmem>>, vector<256x4xf32>
    %c0_8 = arith.constant 0 : index
    %c0_9 = arith.constant 0 : index
    %11 = vector.load %arg5[%c0_8, %c0_9] : memref<256x4xf32, #tpu.memory_space<vmem>>, vector<256x4xf32>
    %c0_10 = arith.constant 0 : index
    %c0_11 = arith.constant 0 : index
    %12 = vector.load %arg6[%c0_10, %c0_11] : memref<1x64xf32, #tpu.memory_space<vmem>>, vector<1x64xf32>
    %13 = arith.truncf %8 : vector<16x128xf32> to vector<16x128xbf16>
    %cst_12 = arith.constant dense<0.000000e+00> : vector<16x256xf32>
    %14 = tpu.matmul %13, %9, %cst_12 {dimension_numbers = #tpu.dot_dimension_numbers<[1], [0], [0], [1], [0, 0, 1, 1], [], []>} : vector<16x128xbf16>, vector<128x256xbf16>, vector<16x256xf32> -> vector<16x256xf32>
    %cst_13 = arith.constant dense<0.000000e+00> : vector<16x4xf32>
    %15 = tpu.matmul %14, %10, %cst_13 {dimension_numbers = #tpu.dot_dimension_numbers<[1], [0], [0], [1], [0, 0, 1, 1], [], []>} : vector<16x256xf32>, vector<256x4xf32>, vector<16x4xf32> -> vector<16x4xf32>
    %cst_14 = arith.constant dense<0.000000e+00> : vector<4x16xf32>
    %16 = tpu.matmul %11, %14, %cst_14 {dimension_numbers = #tpu.dot_dimension_numbers<[0], [1], [1], [0], [0, 1, 1, 0], [], []>} : vector<256x4xf32>, vector<16x256xf32>, vector<4x16xf32> -> vector<4x16xf32>
    %17 = vector.extract_strided_slice %14 {offsets = [0, 0], sizes = [16, 128], strides = [1, 1]} : vector<16x256xf32> to vector<16x128xf32>
    %18 = vector.extract_strided_slice %14 {offsets = [0, 128], sizes = [16, 128], strides = [1, 1]} : vector<16x256xf32> to vector<16x128xf32>
    %19 = tpu.concatenate %17, %18 in 0 : vector<16x128xf32>, vector<16x128xf32> -> vector<32x128xf32>
    %20 = arith.truncf %19 : vector<32x128xf32> to vector<32x128xbf16>
    %21 = vector.extract_strided_slice %15 {offsets = [0, 0], sizes = [16, 1], strides = [1, 1]} : vector<16x4xf32> to vector<16x1xf32>
    %22 = vector.extract_strided_slice %16 {offsets = [0, 0], sizes = [1, 16], strides = [1, 1]} : vector<4x16xf32> to vector<1x16xf32>
    %23 = vector.broadcast %21 : vector<16x1xf32> to vector<16x16xf32>
    %24 = vector.broadcast %22 : vector<1x16xf32> to vector<16x16xf32>
    %25 = arith.addf %23, %24 : vector<16x16xf32>
    %26 = vector.extract_strided_slice %15 {offsets = [0, 2], sizes = [16, 1], strides = [1, 1]} : vector<16x4xf32> to vector<16x1xf32>
    %27 = vector.extract_strided_slice %16 {offsets = [2, 0], sizes = [1, 16], strides = [1, 1]} : vector<4x16xf32> to vector<1x16xf32>
    %28 = vector.broadcast %26 : vector<16x1xf32> to vector<16x16xf32>
    %29 = vector.broadcast %27 : vector<1x16xf32> to vector<16x16xf32>
    %30 = arith.addf %28, %29 : vector<16x16xf32>
    %31 = tpu.concatenate %25, %30 in 1 : vector<16x16xf32>, vector<16x16xf32> -> vector<16x32xf32>
    %cst_15 = arith.constant 0.000000e+00 : f32
    %32 = vector.broadcast %cst_15 : f32 to vector<16x32xf32>
    %33 = arith.cmpf oge, %31, %32 : vector<16x32xf32>
    %cst_16 = arith.constant 2.000000e-01 : f32
    %34 = vector.broadcast %cst_16 : f32 to vector<16x32xf32>
    %35 = arith.mulf %34, %31 : vector<16x32xf32>
    %36 = arith.select %33, %31, %35 : vector<16x32xi1>, vector<16x32xf32>
    %cst_17 = arith.constant 5.000000e-01 : f32
    %37 = vector.broadcast %cst_17 : f32 to vector<16x32xf32>
    %38 = arith.cmpf ogt, %1, %37 : vector<16x32xf32>
    %cst_18 = arith.constant -1.000000e+30 : f32
    %39 = vector.broadcast %cst_18 : f32 to vector<16x32xf32>
    %40 = arith.select %38, %36, %39 : vector<16x32xi1>, vector<16x32xf32>
    %cst_19 = arith.constant dense<0xFF800000> : vector<16xf32>
    %41 = vector.multi_reduction <maximumf>, %40, %cst_19 [1] : vector<16x32xf32> to vector<16xf32>
    %42 = vector.shape_cast %41 : vector<16xf32> to vector<16x1xf32>
    %43 = vector.broadcast %42 : vector<16x1xf32> to vector<16x32xf32>
    %44 = arith.subf %40, %43 : vector<16x32xf32>
    %45 = math.exp %44 : vector<16x32xf32>
    %cst_20 = arith.constant dense<0.000000e+00> : vector<16xf32>
    %46 = vector.multi_reduction <add>, %45, %cst_20 [1] : vector<16x32xf32> to vector<16xf32>
    %47 = vector.shape_cast %46 : vector<16xf32> to vector<16x1xf32>
    %48 = tpu.reciprocal %47 {approx = true} : vector<16x1xf32> -> vector<16x1xf32>
    %49 = arith.mulf %48, %7 : vector<16x1xf32>
    %50 = arith.truncf %45 : vector<16x32xf32> to vector<16x32xbf16>
    %51 = vector.extract_strided_slice %20 {offsets = [0, 0], sizes = [32, 64], strides = [1, 1]} : vector<32x128xbf16> to vector<32x64xbf16>
    %cst_21 = arith.constant dense<0.000000e+00> : vector<16x64xf32>
    %52 = tpu.matmul %50, %51, %cst_21 {dimension_numbers = #tpu.dot_dimension_numbers<[1], [0], [0], [1], [0, 0, 1, 1], [], []>} : vector<16x32xbf16>, vector<32x64xbf16>, vector<16x64xf32> -> vector<16x64xf32>
    %53 = vector.broadcast %49 : vector<16x1xf32> to vector<16x64xf32>
    %54 = arith.mulf %52, %53 : vector<16x64xf32>
    %55 = vector.extract_strided_slice %15 {offsets = [0, 1], sizes = [16, 1], strides = [1, 1]} : vector<16x4xf32> to vector<16x1xf32>
    %56 = vector.extract_strided_slice %16 {offsets = [1, 0], sizes = [1, 16], strides = [1, 1]} : vector<4x16xf32> to vector<1x16xf32>
    %57 = vector.broadcast %55 : vector<16x1xf32> to vector<16x16xf32>
    %58 = vector.broadcast %56 : vector<1x16xf32> to vector<16x16xf32>
    %59 = arith.addf %57, %58 : vector<16x16xf32>
    %60 = vector.extract_strided_slice %15 {offsets = [0, 3], sizes = [16, 1], strides = [1, 1]} : vector<16x4xf32> to vector<16x1xf32>
    %61 = vector.extract_strided_slice %16 {offsets = [3, 0], sizes = [1, 16], strides = [1, 1]} : vector<4x16xf32> to vector<1x16xf32>
    %62 = vector.broadcast %60 : vector<16x1xf32> to vector<16x16xf32>
    %63 = vector.broadcast %61 : vector<1x16xf32> to vector<16x16xf32>
    %64 = arith.addf %62, %63 : vector<16x16xf32>
    %65 = tpu.concatenate %59, %64 in 1 : vector<16x16xf32>, vector<16x16xf32> -> vector<16x32xf32>
    %cst_22 = arith.constant 0.000000e+00 : f32
    %66 = vector.broadcast %cst_22 : f32 to vector<16x32xf32>
    %67 = arith.cmpf oge, %65, %66 : vector<16x32xf32>
    %cst_23 = arith.constant 2.000000e-01 : f32
    %68 = vector.broadcast %cst_23 : f32 to vector<16x32xf32>
    %69 = arith.mulf %68, %65 : vector<16x32xf32>
    %70 = arith.select %67, %65, %69 : vector<16x32xi1>, vector<16x32xf32>
    %cst_24 = arith.constant 5.000000e-01 : f32
    %71 = vector.broadcast %cst_24 : f32 to vector<16x32xf32>
    %72 = arith.cmpf ogt, %1, %71 : vector<16x32xf32>
    %cst_25 = arith.constant -1.000000e+30 : f32
    %73 = vector.broadcast %cst_25 : f32 to vector<16x32xf32>
    %74 = arith.select %72, %70, %73 : vector<16x32xi1>, vector<16x32xf32>
    %cst_26 = arith.constant dense<0xFF800000> : vector<16xf32>
    %75 = vector.multi_reduction <maximumf>, %74, %cst_26 [1] : vector<16x32xf32> to vector<16xf32>
    %76 = vector.shape_cast %75 : vector<16xf32> to vector<16x1xf32>
    %77 = vector.broadcast %76 : vector<16x1xf32> to vector<16x32xf32>
    %78 = arith.subf %74, %77 : vector<16x32xf32>
    %79 = math.exp %78 : vector<16x32xf32>
    %cst_27 = arith.constant dense<0.000000e+00> : vector<16xf32>
    %80 = vector.multi_reduction <add>, %79, %cst_27 [1] : vector<16x32xf32> to vector<16xf32>
    %81 = vector.shape_cast %80 : vector<16xf32> to vector<16x1xf32>
    %82 = tpu.reciprocal %81 {approx = true} : vector<16x1xf32> -> vector<16x1xf32>
    %83 = arith.mulf %82, %7 : vector<16x1xf32>
    %84 = arith.truncf %79 : vector<16x32xf32> to vector<16x32xbf16>
    %85 = vector.extract_strided_slice %20 {offsets = [0, 64], sizes = [32, 64], strides = [1, 1]} : vector<32x128xbf16> to vector<32x64xbf16>
    %cst_28 = arith.constant dense<0.000000e+00> : vector<16x64xf32>
    %86 = tpu.matmul %84, %85, %cst_28 {dimension_numbers = #tpu.dot_dimension_numbers<[1], [0], [0], [1], [0, 0, 1, 1], [], []>} : vector<16x32xbf16>, vector<32x64xbf16>, vector<16x64xf32> -> vector<16x64xf32>
    %87 = vector.broadcast %83 : vector<16x1xf32> to vector<16x64xf32>
    %88 = arith.mulf %86, %87 : vector<16x64xf32>
    %89 = arith.addf %54, %88 : vector<16x64xf32>
    %cst_29 = arith.constant 5.000000e-01 : f32
    %90 = vector.broadcast %cst_29 : f32 to vector<16x64xf32>
    %91 = arith.mulf %89, %90 : vector<16x64xf32>
    %92 = vector.broadcast %12 : vector<1x64xf32> to vector<16x64xf32>
    %93 = arith.addf %91, %92 : vector<16x64xf32>
    %cst_30 = arith.constant 0.000000e+00 : f32
    %94 = vector.broadcast %cst_30 : f32 to vector<16x64xf32>
    %95 = arith.cmpf oge, %93, %94 : vector<16x64xf32>
    %cst_31 = arith.constant 0.00999999977 : f32
    %96 = vector.broadcast %cst_31 : f32 to vector<16x64xf32>
    %97 = arith.mulf %96, %93 : vector<16x64xf32>
    %98 = arith.select %95, %93, %97 : vector<16x64xi1>, vector<16x64xf32>
    %c0_32 = arith.constant 0 : index
    %c0_33 = arith.constant 0 : index
    %99 = vector.load %arg7[%c0_32, %c0_33] : memref<1x64xf32, #tpu.memory_space<vmem>>, vector<1x64xf32>
    %c0_34 = arith.constant 0 : index
    %c0_35 = arith.constant 0 : index
    %100 = vector.load %arg8[%c0_34, %c0_35] : memref<1x64xf32, #tpu.memory_space<vmem>>, vector<1x64xf32>
    %cst_36 = arith.constant dense<0.000000e+00> : vector<64xf32>
    %101 = vector.multi_reduction <add>, %98, %cst_36 [0] : vector<16x64xf32> to vector<64xf32>
    %102 = vector.shape_cast %101 : vector<64xf32> to vector<1x64xf32>
    %cst_37 = arith.constant 1.600000e+01 : f32
    %103 = vector.broadcast %cst_37 : f32 to vector<1x64xf32>
    %104 = arith.divf %102, %103 : vector<1x64xf32>
    %105 = vector.broadcast %104 : vector<1x64xf32> to vector<16x64xf32>
    %106 = arith.subf %98, %105 : vector<16x64xf32>
    %107 = arith.mulf %106, %106 : vector<16x64xf32>
    %cst_38 = arith.constant dense<0.000000e+00> : vector<64xf32>
    %108 = vector.multi_reduction <add>, %107, %cst_38 [0] : vector<16x64xf32> to vector<64xf32>
    %109 = vector.shape_cast %108 : vector<64xf32> to vector<1x64xf32>
    %cst_39 = arith.constant 1.600000e+01 : f32
    %110 = vector.broadcast %cst_39 : f32 to vector<1x64xf32>
    %111 = arith.divf %109, %110 : vector<1x64xf32>
    %cst_40 = arith.constant 9.99999974E-6 : f32
    %112 = vector.broadcast %cst_40 : f32 to vector<1x64xf32>
    %113 = arith.addf %111, %112 : vector<1x64xf32>
    %114 = math.rsqrt %113 : vector<1x64xf32>
    %115 = vector.broadcast %114 : vector<1x64xf32> to vector<16x64xf32>
    %116 = arith.mulf %106, %115 : vector<16x64xf32>
    %117 = vector.broadcast %99 : vector<1x64xf32> to vector<16x64xf32>
    %118 = arith.mulf %116, %117 : vector<16x64xf32>
    %119 = vector.broadcast %100 : vector<1x64xf32> to vector<16x64xf32>
    %120 = arith.addf %118, %119 : vector<16x64xf32>
    %c0_41 = arith.constant 0 : index
    %c0_42 = arith.constant 0 : index
    %121 = vector.load %arg9[%c0_41, %c0_42] : memref<64x128xbf16, #tpu.memory_space<vmem>>, vector<64x128xbf16>
    %c0_43 = arith.constant 0 : index
    %c0_44 = arith.constant 0 : index
    %122 = vector.load %arg10[%c0_43, %c0_44] : memref<128x2xf32, #tpu.memory_space<vmem>>, vector<128x2xf32>
    %c0_45 = arith.constant 0 : index
    %c0_46 = arith.constant 0 : index
    %123 = vector.load %arg11[%c0_45, %c0_46] : memref<128x2xf32, #tpu.memory_space<vmem>>, vector<128x2xf32>
    %c0_47 = arith.constant 0 : index
    %c0_48 = arith.constant 0 : index
    %124 = vector.load %arg12[%c0_47, %c0_48] : memref<1x64xf32, #tpu.memory_space<vmem>>, vector<1x64xf32>
    %125 = arith.truncf %120 : vector<16x64xf32> to vector<16x64xbf16>
    %cst_49 = arith.constant dense<0.000000e+00> : vector<16x128xf32>
    %126 = tpu.matmul %125, %121, %cst_49 {dimension_numbers = #tpu.dot_dimension_numbers<[1], [0], [0], [1], [0, 0, 1, 1], [], []>} : vector<16x64xbf16>, vector<64x128xbf16>, vector<16x128xf32> -> vector<16x128xf32>
    %cst_50 = arith.constant dense<0.000000e+00> : vector<16x2xf32>
    %127 = tpu.matmul %126, %122, %cst_50 {dimension_numbers = #tpu.dot_dimension_numbers<[1], [0], [0], [1], [0, 0, 1, 1], [], []>} : vector<16x128xf32>, vector<128x2xf32>, vector<16x2xf32> -> vector<16x2xf32>
    %cst_51 = arith.constant dense<0.000000e+00> : vector<2x16xf32>
    %128 = tpu.matmul %123, %126, %cst_51 {dimension_numbers = #tpu.dot_dimension_numbers<[0], [1], [1], [0], [0, 1, 1, 0], [], []>} : vector<128x2xf32>, vector<16x128xf32>, vector<2x16xf32> -> vector<2x16xf32>
    %129 = vector.extract_strided_slice %126 {offsets = [0, 0], sizes = [16, 64], strides = [1, 1]} : vector<16x128xf32> to vector<16x64xf32>
    %130 = vector.extract_strided_slice %126 {offsets = [0, 64], sizes = [16, 64], strides = [1, 1]} : vector<16x128xf32> to vector<16x64xf32>
    %131 = tpu.concatenate %129, %130 in 0 : vector<16x64xf32>, vector<16x64xf32> -> vector<32x64xf32>
    %132 = arith.truncf %131 : vector<32x64xf32> to vector<32x64xbf16>
    %133 = vector.extract_strided_slice %127 {offsets = [0, 0], sizes = [16, 1], strides = [1, 1]} : vector<16x2xf32> to vector<16x1xf32>
    %134 = vector.extract_strided_slice %128 {offsets = [0, 0], sizes = [1, 16], strides = [1, 1]} : vector<2x16xf32> to vector<1x16xf32>
    %135 = vector.broadcast %133 : vector<16x1xf32> to vector<16x16xf32>
    %136 = vector.broadcast %134 : vector<1x16xf32> to vector<16x16xf32>
    %137 = arith.addf %135, %136 : vector<16x16xf32>
    %138 = vector.extract_strided_slice %127 {offsets = [0, 1], sizes = [16, 1], strides = [1, 1]} : vector<16x2xf32> to vector<16x1xf32>
    %139 = vector.extract_strided_slice %128 {offsets = [1, 0], sizes = [1, 16], strides = [1, 1]} : vector<2x16xf32> to vector<1x16xf32>
    %140 = vector.broadcast %138 : vector<16x1xf32> to vector<16x16xf32>
    %141 = vector.broadcast %139 : vector<1x16xf32> to vector<16x16xf32>
    %142 = arith.addf %140, %141 : vector<16x16xf32>
    %143 = tpu.concatenate %137, %142 in 1 : vector<16x16xf32>, vector<16x16xf32> -> vector<16x32xf32>
    %cst_52 = arith.constant 0.000000e+00 : f32
    %144 = vector.broadcast %cst_52 : f32 to vector<16x32xf32>
    %145 = arith.cmpf oge, %143, %144 : vector<16x32xf32>
    %cst_53 = arith.constant 2.000000e-01 : f32
    %146 = vector.broadcast %cst_53 : f32 to vector<16x32xf32>
    %147 = arith.mulf %146, %143 : vector<16x32xf32>
    %148 = arith.select %145, %143, %147 : vector<16x32xi1>, vector<16x32xf32>
    %cst_54 = arith.constant 5.000000e-01 : f32
    %149 = vector.broadcast %cst_54 : f32 to vector<16x32xf32>
    %150 = arith.cmpf ogt, %1, %149 : vector<16x32xf32>
    %cst_55 = arith.constant -1.000000e+30 : f32
    %151 = vector.broadcast %cst_55 : f32 to vector<16x32xf32>
    %152 = arith.select %150, %148, %151 : vector<16x32xi1>, vector<16x32xf32>
    %cst_56 = arith.constant dense<0xFF800000> : vector<16xf32>
    %153 = vector.multi_reduction <maximumf>, %152, %cst_56 [1] : vector<16x32xf32> to vector<16xf32>
    %154 = vector.shape_cast %153 : vector<16xf32> to vector<16x1xf32>
    %155 = vector.broadcast %154 : vector<16x1xf32> to vector<16x32xf32>
    %156 = arith.subf %152, %155 : vector<16x32xf32>
    %157 = math.exp %156 : vector<16x32xf32>
    %cst_57 = arith.constant dense<0.000000e+00> : vector<16xf32>
    %158 = vector.multi_reduction <add>, %157, %cst_57 [1] : vector<16x32xf32> to vector<16xf32>
    %159 = vector.shape_cast %158 : vector<16xf32> to vector<16x1xf32>
    %160 = tpu.reciprocal %159 {approx = true} : vector<16x1xf32> -> vector<16x1xf32>
    %161 = arith.mulf %160, %7 : vector<16x1xf32>
    %162 = arith.truncf %157 : vector<16x32xf32> to vector<16x32xbf16>
    %cst_58 = arith.constant dense<0.000000e+00> : vector<16x64xf32>
    %163 = tpu.matmul %162, %132, %cst_58 {dimension_numbers = #tpu.dot_dimension_numbers<[1], [0], [0], [1], [0, 0, 1, 1], [], []>} : vector<16x32xbf16>, vector<32x64xbf16>, vector<16x64xf32> -> vector<16x64xf32>
    %164 = vector.broadcast %161 : vector<16x1xf32> to vector<16x64xf32>
    %165 = arith.mulf %163, %164 : vector<16x64xf32>
    %166 = vector.broadcast %124 : vector<1x64xf32> to vector<16x64xf32>
    %167 = arith.addf %165, %166 : vector<16x64xf32>
    %cst_59 = arith.constant 0.000000e+00 : f32
    %168 = vector.broadcast %cst_59 : f32 to vector<16x64xf32>
    %169 = arith.cmpf oge, %167, %168 : vector<16x64xf32>
    %cst_60 = arith.constant 0.00999999977 : f32
    %170 = vector.broadcast %cst_60 : f32 to vector<16x64xf32>
    %171 = arith.mulf %170, %167 : vector<16x64xf32>
    %172 = arith.select %169, %167, %171 : vector<16x64xi1>, vector<16x64xf32>
    %c0_61 = arith.constant 0 : index
    %c0_62 = arith.constant 0 : index
    %173 = vector.load %arg13[%c0_61, %c0_62] : memref<1x64xf32, #tpu.memory_space<vmem>>, vector<1x64xf32>
    %c0_63 = arith.constant 0 : index
    %c0_64 = arith.constant 0 : index
    %174 = vector.load %arg14[%c0_63, %c0_64] : memref<1x64xf32, #tpu.memory_space<vmem>>, vector<1x64xf32>
    %cst_65 = arith.constant dense<0.000000e+00> : vector<64xf32>
    %175 = vector.multi_reduction <add>, %172, %cst_65 [0] : vector<16x64xf32> to vector<64xf32>
    %176 = vector.shape_cast %175 : vector<64xf32> to vector<1x64xf32>
    %cst_66 = arith.constant 1.600000e+01 : f32
    %177 = vector.broadcast %cst_66 : f32 to vector<1x64xf32>
    %178 = arith.divf %176, %177 : vector<1x64xf32>
    %179 = vector.broadcast %178 : vector<1x64xf32> to vector<16x64xf32>
    %180 = arith.subf %172, %179 : vector<16x64xf32>
    %181 = arith.mulf %180, %180 : vector<16x64xf32>
    %cst_67 = arith.constant dense<0.000000e+00> : vector<64xf32>
    %182 = vector.multi_reduction <add>, %181, %cst_67 [0] : vector<16x64xf32> to vector<64xf32>
    %183 = vector.shape_cast %182 : vector<64xf32> to vector<1x64xf32>
    %cst_68 = arith.constant 1.600000e+01 : f32
    %184 = vector.broadcast %cst_68 : f32 to vector<1x64xf32>
    %185 = arith.divf %183, %184 : vector<1x64xf32>
    %cst_69 = arith.constant 9.99999974E-6 : f32
    %186 = vector.broadcast %cst_69 : f32 to vector<1x64xf32>
    %187 = arith.addf %185, %186 : vector<1x64xf32>
    %188 = math.rsqrt %187 : vector<1x64xf32>
    %189 = vector.broadcast %188 : vector<1x64xf32> to vector<16x64xf32>
    %190 = arith.mulf %180, %189 : vector<16x64xf32>
    %191 = vector.broadcast %173 : vector<1x64xf32> to vector<16x64xf32>
    %192 = arith.mulf %190, %191 : vector<16x64xf32>
    %193 = vector.broadcast %174 : vector<1x64xf32> to vector<16x64xf32>
    %194 = arith.addf %192, %193 : vector<16x64xf32>
    %195 = tpu.iota {dimensions = array<i32: 1>} : vector<8x16xi32>
    %c0_70 = arith.constant 0 : index
    %c0_71 = arith.constant 0 : index
    %196 = vector.load %arg2[%c0_70, %c0_71] : memref<8x1xi32, #tpu.memory_space<vmem>>, vector<8x1xi32>
    %197 = vector.broadcast %196 : vector<8x1xi32> to vector<8x16xi32>
    %198 = arith.cmpi eq, %195, %197 : vector<8x16xi32>
    %cst_72 = arith.constant 1.000000e+00 : f32
    %cst_73 = arith.constant 0.000000e+00 : f32
    %199 = vector.broadcast %cst_72 : f32 to vector<8x16xf32>
    %200 = vector.broadcast %cst_73 : f32 to vector<8x16xf32>
    %201 = arith.select %198, %199, %200 : vector<8x16xi1>, vector<8x16xf32>
    %202 = arith.truncf %201 : vector<8x16xf32> to vector<8x16xbf16>
    %203 = arith.truncf %194 : vector<16x64xf32> to vector<16x64xbf16>
    %cst_74 = arith.constant dense<0.000000e+00> : vector<8x64xf32>
    %204 = tpu.matmul %202, %203, %cst_74 {dimension_numbers = #tpu.dot_dimension_numbers<[1], [0], [0], [1], [0, 0, 1, 1], [], []>} : vector<8x16xbf16>, vector<16x64xbf16>, vector<8x64xf32> -> vector<8x64xf32>
    %205 = arith.truncf %204 : vector<8x64xf32> to vector<8x64xbf16>
    %c0_75 = arith.constant 0 : index
    %c0_76 = arith.constant 0 : index
    %206 = vector.load %arg15[%c0_75, %c0_76] : memref<64x32xbf16, #tpu.memory_space<vmem>>, vector<64x32xbf16>
    %cst_77 = arith.constant dense<0.000000e+00> : vector<8x32xf32>
    %207 = tpu.matmul %205, %206, %cst_77 {dimension_numbers = #tpu.dot_dimension_numbers<[1], [0], [0], [1], [0, 0, 1, 1], [], []>} : vector<8x64xbf16>, vector<64x32xbf16>, vector<8x32xf32> -> vector<8x32xf32>
    %c0_78 = arith.constant 0 : index
    %c0_79 = arith.constant 0 : index
    %208 = vector.load %arg16[%c0_78, %c0_79] : memref<1x32xf32, #tpu.memory_space<vmem>>, vector<1x32xf32>
    %209 = vector.broadcast %208 : vector<1x32xf32> to vector<8x32xf32>
    %210 = arith.addf %207, %209 : vector<8x32xf32>
    %cst_80 = arith.constant 0.000000e+00 : f32
    %211 = vector.broadcast %cst_80 : f32 to vector<8x32xf32>
    %212 = arith.cmpf oge, %210, %211 : vector<8x32xf32>
    %cst_81 = arith.constant 0.00999999977 : f32
    %213 = vector.broadcast %cst_81 : f32 to vector<8x32xf32>
    %214 = arith.mulf %213, %210 : vector<8x32xf32>
    %215 = arith.select %212, %210, %214 : vector<8x32xi1>, vector<8x32xf32>
    %216 = arith.truncf %215 : vector<8x32xf32> to vector<8x32xbf16>
    %c0_82 = arith.constant 0 : index
    %c0_83 = arith.constant 0 : index
    %217 = vector.load %arg17[%c0_82, %c0_83] : memref<32x16xbf16, #tpu.memory_space<vmem>>, vector<32x16xbf16>
    %cst_84 = arith.constant dense<0.000000e+00> : vector<8x16xf32>
    %218 = tpu.matmul %216, %217, %cst_84 {dimension_numbers = #tpu.dot_dimension_numbers<[1], [0], [0], [1], [0, 0, 1, 1], [], []>} : vector<8x32xbf16>, vector<32x16xbf16>, vector<8x16xf32> -> vector<8x16xf32>
    %c0_85 = arith.constant 0 : index
    %c0_86 = arith.constant 0 : index
    %219 = vector.load %arg18[%c0_85, %c0_86] : memref<1x16xf32, #tpu.memory_space<vmem>>, vector<1x16xf32>
    %220 = vector.broadcast %219 : vector<1x16xf32> to vector<8x16xf32>
    %221 = arith.addf %218, %220 : vector<8x16xf32>
    %cst_87 = arith.constant 0.000000e+00 : f32
    %222 = vector.broadcast %cst_87 : f32 to vector<8x16xf32>
    %223 = arith.cmpf oge, %221, %222 : vector<8x16xf32>
    %cst_88 = arith.constant 0.00999999977 : f32
    %224 = vector.broadcast %cst_88 : f32 to vector<8x16xf32>
    %225 = arith.mulf %224, %221 : vector<8x16xf32>
    %226 = arith.select %223, %221, %225 : vector<8x16xi1>, vector<8x16xf32>
    %227 = arith.truncf %226 : vector<8x16xf32> to vector<8x16xbf16>
    %c0_89 = arith.constant 0 : index
    %c0_90 = arith.constant 0 : index
    %228 = vector.load %arg19[%c0_89, %c0_90] : memref<16x5xbf16, #tpu.memory_space<vmem>>, vector<16x5xbf16>
    %cst_91 = arith.constant dense<0.000000e+00> : vector<8x5xf32>
    %229 = tpu.matmul %227, %228, %cst_91 {dimension_numbers = #tpu.dot_dimension_numbers<[1], [0], [0], [1], [0, 0, 1, 1], [], []>} : vector<8x16xbf16>, vector<16x5xbf16>, vector<8x5xf32> -> vector<8x5xf32>
    %c0_92 = arith.constant 0 : index
    %c0_93 = arith.constant 0 : index
    %230 = vector.load %arg20[%c0_92, %c0_93] : memref<1x5xf32, #tpu.memory_space<vmem>>, vector<1x5xf32>
    %231 = vector.broadcast %230 : vector<1x5xf32> to vector<8x5xf32>
    %232 = arith.addf %229, %231 : vector<8x5xf32>
    %c0_94 = arith.constant 0 : index
    %c0_95 = arith.constant 0 : index
    %233 = vector.load %arg21[%c0_94, %c0_95] : memref<8x5xf32, #tpu.memory_space<vmem>>, vector<8x5xf32>
    tpu.vector_store %arg21[%c0_94, %c0_95], %232 {strides = array<i32>} : memref<8x5xf32, #tpu.memory_space<vmem>>, vector<8x5xf32>,
    %cst_96 = arith.constant 0.000000e+00 : f32
    %234 = vector.broadcast %cst_96 : f32 to vector<8x5xf32>
    %235 = arith.subf %234, %232 : vector<8x5xf32>
    %236 = math.exp %235 : vector<8x5xf32>
    %cst_97 = arith.constant 1.000000e+00 : f32
    %237 = vector.broadcast %cst_97 : f32 to vector<8x5xf32>
    %238 = arith.addf %237, %236 : vector<8x5xf32>
    %239 = tpu.reciprocal %238 {approx = true} : vector<8x5xf32> -> vector<8x5xf32>
    %c0_98 = arith.constant 0 : index
    %c0_99 = arith.constant 0 : index
    %240 = vector.load %arg22[%c0_98, %c0_99] : memref<8x5xf32, #tpu.memory_space<vmem>>, vector<8x5xf32>
    tpu.vector_store %arg22[%c0_98, %c0_99], %239 {strides = array<i32>} : memref<8x5xf32, #tpu.memory_space<vmem>>, vector<8x5xf32>,
    return
  }
}

</mosaic_0001>

<bundles_post_ra>
// kernel: tpu_custom_call.1
= control target key start
LH: loop header
LB: loop body
LE: loop exit
PB: predicated region body
PF: predicated region fallthrough
CT: control target
= control target key end

     0   :  { %s2797_s0 = inlined_call_operand.vmem [shape: f32[16,128], index: 0, kind: input, shape index: {}]   ;;  %s2798_s1 = inlined_call_operand.vmem [shape: s8[16,32], index: 1, kind: input, shape index: {}]   ;;  %s2799_s2 = inlined_call_operand.vmem [shape: s32[8,1], index: 2, kind: input, shape index: {}]   ;;  %s2800_s3 = inlined_call_operand.vmem [shape: bf16[128,256], index: 3, kind: input, shape index: {}]   ;;  %s2801_s4 = inlined_call_operand.vmem [shape: f32[256,4], index: 4, kind: input, shape index: {}]   ;;  %s2802_s5 = inlined_call_operand.vmem [shape: f32[256,4], index: 5, kind: input, shape index: {}]   ;;  %s2803_s6 = inlined_call_operand.vmem [shape: f32[1,64], index: 6, kind: input, shape index: {}]   ;;  %s2804_s7 = inlined_call_operand.vmem [shape: f32[1,64], index: 7, kind: input, shape index: {}]   ;;  %s2805_s8 = inlined_call_operand.vmem [shape: f32[1,64], index: 8, kind: input, shape index: {}]   ;;  %s2806_s9 = inlined_call_operand.vmem [shape: bf16[64,128], index: 9, kind: input, shape index: {}]   ;;  %s2807_s10 = inlined_call_operand.vmem [shape: f32[128,2], index: 10, kind: input, shape index: {}]   ;;  %s2808_s11 = inlined_call_operand.vmem [shape: f32[128,2], index: 11, kind: input, shape index: {}]   ;;  %s2809_s12 = inlined_call_operand.vmem [shape: f32[1,64], index: 12, kind: input, shape index: {}]   ;;  %s2810_s13 = inlined_call_operand.vmem [shape: f32[1,64], index: 13, kind: input, shape index: {}]   ;;  %s2811_s14 = inlined_call_operand.vmem [shape: f32[1,64], index: 14, kind: input, shape index: {}]   ;;  %s2812_s15 = inlined_call_operand.vmem [shape: bf16[64,32], index: 15, kind: input, shape index: {}]   ;;  %s2813_s16 = inlined_call_operand.vmem [shape: f32[1,32], index: 16, kind: input, shape index: {}]   ;;  %s2814_s17 = inlined_call_operand.vmem [shape: bf16[32,16], index: 17, kind: input, shape index: {}]   ;;  %s2815_s18 = inlined_call_operand.vmem [shape: f32[1,16], index: 18, kind: input, shape index: {}]   ;;  %s2816_s19 = inlined_call_operand.vmem [shape: bf16[16,5], index: 19, kind: input, shape index: {}]   ;;  %s2817_s20 = inlined_call_operand.vmem [shape: f32[1,5], index: 20, kind: input, shape index: {}]   ;;  %s2818_s21 = inlined_call_operand.hbm [shape: f32[8,5], index: 21, kind: output, shape index: {0}]   ;;  %s2819_s22 = inlined_call_operand.hbm [shape: f32[8,5], index: 22, kind: output, shape index: {1}]  }
   0x1   :  { %2824 = sst [smem:[#allocation8_spill]] %s2797_s0 }
   0x2   :  { %2825 = sst [smem:[#allocation9_spill]] %s2798_s1 }
   0x3   :  { %2826 = sst [smem:[#allocation10_spill]] %s2799_s2 }
   0x4   :  { %2827 = sst [smem:[#allocation11_spill]] %s2800_s3 }
   0x5   :  { %2828 = sst [smem:[#allocation12_spill]] %s2801_s4 }
   0x6   :  { %2829 = sst [smem:[#allocation13_spill]] %s2802_s5 }
   0x7   :  { %2830 = sst [smem:[#allocation14_spill]] %s2803_s6 }
   0x8   :  { %28 = vsyncpa [#allocation3], 0  ;;  %s2831_s29 = sld [smem:[#allocation11_spill]]  ;;  %v2092_v2 = vmov 0   ;;  %s2832_s1 = sld [smem:[#allocation12_spill]] }
   0x9   :  { %288 = vmatprep.mubr.bf16.mxu0 %v2092_v2  ;;  %s2833_s3 = sld [smem:[#allocation13_spill]]  ;;  %s2834_s4 = sld [smem:[#allocation8_spill]] }
   0xe   :  { %v1977_v0 = vld [vmem:[%s2831_s29 + $0x4] ss:$8 sps:$4 sm:$0xff]   ;;  %v1979_v1 = vld [vmem:[%s2831_s29] ss:$8 sps:$4 sm:$0xff]   ;;  %v1980_v3 = vld [vmem:[%s2831_s29 + $0x14] ss:$8 sps:$4 sm:$0xff]  }
   0xf   :  { %256 = vmatprep.subr.bf16.mxu0 %v1977_v0  ;;  %v1982_v4 = vld [vmem:[%s2831_s29 + $0x10] ss:$8 sps:$4 sm:$0xff]   ;;  %v1983_v5 = vld [vmem:[%s2831_s29 + $0x24] ss:$8 sps:$4 sm:$0xff]   ;;  %v1985_v6 = vld [vmem:[%s2831_s29 + $0x20] ss:$8 sps:$4 sm:$0xff]  }
  0x10   :  { %257 = vmatpush1.bf16.msra.mxu0 %v1979_v1  ;;  %v1986_v7 = vld [vmem:[%s2831_s29 + $0x34] ss:$8 sps:$4 sm:$0xff]   ;;  %v1988_v8 = vld [vmem:[%s2831_s29 + $0x30] ss:$8 sps:$4 sm:$0xff]   ;;  %v1989_v9 = vld [vmem:[%s2831_s29 + $0x44] ss:$8 sps:$4 sm:$0xff]  }
  0x11   :  { %258 = vmatprep.subr.bf16.mxu0 %v1980_v3  ;;  %v126_v10 = vld [vmem:[%s2832_s1 + $0x80] sm:$0xff]  ;;  %v127_v11 = vld [vmem:[%s2832_s1 + $0x88] sm:$0xff]  ;;  %v128_v15 = vld [vmem:[%s2832_s1 + $0x90] sm:$0xff] }
  0x12   :  { %v1842_v12 = vpack.c.bf16 %v127_v11, %v126_v10  ;;  %v110_v13 = vld [vmem:[%s2832_s1] sm:$0xff]  ;;  %v111_v14 = vld [vmem:[%s2832_s1 + $0x8] sm:$0xff]  ;;  %v129_v17 = vld [vmem:[%s2832_s1 + $0x98] sm:$0xff] }
  0x13   :  { %v1844_v16 = vpack.c.bf16 %v111_v14, %v110_v13  ;;  %v112_v18 = vld [vmem:[%s2832_s1 + $0x10] sm:$0xff]  ;;  %v113_v19 = vld [vmem:[%s2832_s1 + $0x18] sm:$0xff]  ;;  %v1846_v20 = vpack.c.bf16 %v129_v17, %v128_v15  ;;  %v130_v21 = vld [vmem:[%s2832_s1 + $0xa0] sm:$0xff] }
  0x14   :  { %259 = vmatpush1.bf16.msra.mxu0 %v1982_v4  ;;  %1843 = vmatprep.subr.bf16.mxu1 %v1842_v12  ;;  %v131_v22 = vld [vmem:[%s2832_s1 + $0xa8] sm:$0xff]  ;;  %v1848_v24 = vpack.c.bf16 %v113_v19, %v112_v18  ;;  %v1992_v25 = vld [vmem:[%s2831_s29 + $0x54] ss:$8 sps:$4 sm:$0xff]   ;;  %v114_v27 = vld [vmem:[%s2832_s1 + $0x20] sm:$0xff] }
  0x15   :  { %260 = vmatprep.subr.bf16.mxu0 %v1983_v5  ;;  %v1991_v23 = vld [vmem:[%s2831_s29 + $0x40] ss:$8 sps:$4 sm:$0xff]   ;;  %1845 = vmatpush3.bf16.msra.mxu1 %v1844_v16  ;;  %v1850_v26 = vpack.c.bf16 %v131_v22, %v130_v21  ;;  %v132_v29 = vld [vmem:[%s2832_s1 + $0xb0] sm:$0xff]  ;;  %v133_v30 = vld [vmem:[%s2832_s1 + $0xb8] sm:$0xff] }
  0x16   :  { %1847 = vmatprep.subr.bf16.mxu1 %v1846_v20  ;;  %v115_v28 = vld [vmem:[%s2832_s1 + $0x28] sm:$0xff]  ;;  %v1994_v31 = vld [vmem:[%s2831_s29 + $0x50] ss:$8 sps:$4 sm:$0xff]   ;;  %v1854_v34 = vpack.c.bf16 %v133_v30, %v132_v29  ;;  %v134_v37 = vld [vmem:[%s2832_s1 + $0xc0] sm:$0xff] }
  0x17   :  { %v1995_v32 = vld [vmem:[%s2831_s29 + $0x64] ss:$8 sps:$4 sm:$0xff]   ;;  %v1852_v33 = vpack.c.bf16 %v115_v28, %v114_v27  ;;  %v116_v35 = vld [vmem:[%s2832_s1 + $0x30] sm:$0xff]  ;;  %v117_v36 = vld [vmem:[%s2832_s1 + $0x38] sm:$0xff] }
  0x18   :  { %261 = vmatpush1.bf16.msra.mxu0 %v1985_v6  ;;  %v1997_v38 = vld [vmem:[%s2831_s29 + $0x60] ss:$8 sps:$4 sm:$0xff]   ;;  %v1998_v42 = vld [vmem:[%s2831_s29 + $0x74] ss:$8 sps:$4 sm:$0xff]   ;;  %v1856_v46 = vpack.c.bf16 %v117_v36, %v116_v35  ;;  %v2000_v49 = vld [vmem:[%s2831_s29 + $0x70] ss:$8 sps:$4 sm:$0xff]  }
  0x19   :  { %262 = vmatprep.subr.bf16.mxu0 %v1986_v7  ;;  %1849 = vmatpush3.bf16.msra.mxu1 %v1848_v24  ;;  %v135_v39 = vld [vmem:[%s2832_s1 + $0xc8] sm:$0xff]  ;;  %v142_v40 = vld [vmem:[%s2833_s3] sm:$0xff]  ;;  %v136_v47 = vld [vmem:[%s2832_s1 + $0xd0] sm:$0xff] }
  0x1a   :  { %1851 = vmatprep.subr.bf16.mxu1 %v1850_v26  ;;  %v158_v41 = vld [vmem:[%s2833_s3 + $0x80] sm:$0xff]  ;;  %v119_v44 = vld [vmem:[%s2832_s1 + $0x48] sm:$0xff]  ;;  %v1858_v48 = vpack.c.bf16 %v135_v39, %v134_v37  ;;  %v137_v52 = vld [vmem:[%s2832_s1 + $0xd8] sm:$0xff] }
  0x1b   :  { %v118_v43 = vld [vmem:[%s2832_s1 + $0x40] sm:$0xff]  ;;  %v1924_v45 = vpack.i.bf16 %v142_v40, %v158_v41  ;;  %v93_v51 = vld [vmem:[%s2834_s4 + $0x8] sm:$0xff]  ;;  %v120_v53 = vld [vmem:[%s2832_s1 + $0x50] sm:$0xff]  ;;  %v1862_v58 = vpack.c.bf16 %v137_v52, %v136_v47 }
  0x1c   :  { %263 = vmatpush1.bf16.msra.mxu0 %v1988_v8  ;;  %v92_v50 = vld [vmem:[%s2834_s4] sm:$0xff]  ;;  %v121_v54 = vld [vmem:[%s2832_s1 + $0x58] sm:$0xff]  ;;  %v1860_v55 = vpack.c.bf16 %v119_v44, %v118_v43  ;;  %v139_v57 = vld [vmem:[%s2832_s1 + $0xe8] sm:$0xff] }
  0x1d   :  { %264 = vmatprep.subr.bf16.mxu0 %v1989_v9  ;;  %1853 = vmatpush3.bf16.msra.mxu1 %v1852_v33  ;;  %v138_v56 = vld [vmem:[%s2832_s1 + $0xe0] sm:$0xff] }
  0x1e   :  { %1855 = vmatprep.subr.bf16.mxu1 %v1854_v34  ;;  %1925 = vxpose.xlu0.b32.start [1/16] (narrow) %v1924_v45, 8 }
  0x20   :  { %265 = vmatpush1.bf16.msra.mxu0 %v1991_v23 }
  0x21   :  { %266 = vmatprep.subr.bf16.mxu0 %v1992_v25  ;;  %1857 = vmatpush3.bf16.msra.mxu1 %v1856_v46 }
  0x22   :  { %1859 = vmatprep.subr.bf16.mxu1 %v1858_v48 }
  0x24   :  { %267 = vmatpush1.bf16.msra.mxu0 %v1994_v31 }
  0x25   :  { %268 = vmatprep.subr.bf16.mxu0 %v1995_v32 }
  0x28   :  { %269 = vmatpush1.bf16.msra.mxu0 %v1997_v38 }
  0x29   :  { %270 = vmatprep.subr.bf16.mxu0 %v1998_v42 }
  0x2a   :  { %29 = vsyncpa [#allocation5], 0  ;;  %v175_v59 = vpack.c.bf16 %v93_v51, %v92_v50  ;;  %1861 = vmatpush3.bf16.msra.mxu1 %v1860_v55  ;;  %v1864_v60 = vpack.c.bf16 %v121_v54, %v120_v53  ;;  %v1866_v61 = vpack.c.bf16 %v139_v57, %v138_v56  ;;  %v122_v62 = vld [vmem:[%s2832_s1 + $0x60] sm:$0xff]  ;;  %v123_v63 = vld [vmem:[%s2832_s1 + $0x68] sm:$0xff]  ;;  %v2093_v11 = vmov 0.0   ;;  %s2098_s6 = smov 64  }
  0x2b   :  { %1863 = vmatprep.subr.bf16.mxu1 %v1862_v58  ;;  %v140_v0 = vld [vmem:[%s2832_s1 + $0xf0] sm:$0xff]  ;;  %v141_v1 = vld [vmem:[%s2832_s1 + $0xf8] sm:$0xff]  ;;  %v1868_v3 = vpack.c.bf16 %v123_v63, %v122_v62  ;;  %v143_v8 = vld [vmem:[%s2833_s3 + $0x8] sm:$0xff]  ;;  %v2094_v63 = vmov 2   ;;  %vm548_vm0 = vcmask 130048   ;;  %vm79_vm3 = vcmask 261120  }
  0x2c   :  { %271 = vmatpush1.bf16.msra.mxu0 %v2000_v49  ;;  %v1870_v4 = vpack.c.bf16 %v141_v1, %v140_v0  ;;  %v124_v5 = vld [vmem:[%s2832_s1 + $0x70] sm:$0xff]  ;;  %v125_v6 = vld [vmem:[%s2832_s1 + $0x78] sm:$0xff]  ;;  %v159_v9 = vld [vmem:[%s2833_s3 + $0x88] sm:$0xff]  ;;  %1961 = vset.pattern.permute.xlu1 %v2094_v63  ;;  %v2095_v0 = vmov 1   ;;  %s2835_s1 = sld [smem:[#allocation9_spill]]  ;;  %vm2099_vm8 = vmmov 0  }
  0x2d   :  { %v1872_v7 = vpack.c.bf16 %v125_v6, %v124_v5  ;;  %v1926_v10 = vpack.i.bf16 %v143_v8, %v159_v9  ;;  %v144_v12 = vld [vmem:[%s2833_s3 + $0x10] sm:$0xff]  ;;  %v145_v15 = vld [vmem:[%s2833_s3 + $0x18] sm:$0xff]  ;;  %v146_v17 = vld [vmem:[%s2833_s3 + $0x20] sm:$0xff]  ;;  %v2096_v8 = vmov 3   ;;  %s2836_s29 = sld [smem:[#allocation14_spill]]  ;;  %vm773_vm12 = vcmask 523264  }
  0x2e   :  { %1865 = vmatpush3.bf16.msra.mxu1 %v1864_v60  ;;  %v160_v13 = vld [vmem:[%s2833_s3 + $0x90] sm:$0xff]  ;;  %v161_v16 = vld [vmem:[%s2833_s3 + $0x98] sm:$0xff]  ;;  %v162_v19 = vld [vmem:[%s2833_s3 + $0xa0] sm:$0xff] }
  0x2f   :  { %289 = vmatmul.mubr.bf16.vlgmr.msra.gmra.mrb[0].mxu0 %v175_v59  ;;  %1867 = vmatprep.subr.bf16.mxu1 %v1866_v61  ;;  %v1928_v14 = vpack.i.bf16 %v144_v12, %v160_v13  ;;  %v1930_v18 = vpack.i.bf16 %v145_v15, %v161_v16  ;;  %v1932_v20 = vpack.i.bf16 %v146_v17, %v162_v19  ;;  %v147_v21 = vld [vmem:[%s2833_s3 + $0x28] sm:$0xff]  ;;  %v148_v24 = vld [vmem:[%s2833_s3 + $0x30] sm:$0xff]  ;;  %v149_v27 = vld [vmem:[%s2833_s3 + $0x38] sm:$0xff]  ;;  %v520_v12 = vlaneseq }
  0x30   :  { %1927 = vxpose.xlu0.b32.cont [2/16] (narrow) %v1926_v10, 8  ;;  %v163_v22 = vld [vmem:[%s2833_s3 + $0xa8] sm:$0xff]  ;;  %v164_v25 = vld [vmem:[%s2833_s3 + $0xb0] sm:$0xff]  ;;  %v165_v28 = vld [vmem:[%s2833_s3 + $0xb8] sm:$0xff] }
  0x31   :  { %v1934_v23 = vpack.i.bf16 %v147_v21, %v163_v22  ;;  %v1936_v26 = vpack.i.bf16 %v148_v24, %v164_v25  ;;  %v1938_v29 = vpack.i.bf16 %v149_v27, %v165_v28  ;;  %v150_v30 = vld [vmem:[%s2833_s3 + $0x40] sm:$0xff]  ;;  %v151_v33 = vld [vmem:[%s2833_s3 + $0x48] sm:$0xff]  ;;  %v152_v36 = vld [vmem:[%s2833_s3 + $0x50] sm:$0xff]  ;;  %v2480_v13 = vshrl.u32 %v520_v12, 7 }
  0x32   :  { %1869 = vmatpush3.bf16.msra.mxu1 %v1868_v3  ;;  %v166_v31 = vld [vmem:[%s2833_s3 + $0xc0] sm:$0xff]  ;;  %v167_v34 = vld [vmem:[%s2833_s3 + $0xc8] sm:$0xff]  ;;  %v168_v37 = vld [vmem:[%s2833_s3 + $0xd0] sm:$0xff] }
  0x33   :  { %1871 = vmatprep.subr.bf16.mxu1 %v1870_v4  ;;  %v1940_v32 = vpack.i.bf16 %v150_v30, %v166_v31  ;;  %v1942_v35 = vpack.i.bf16 %v151_v33, %v167_v34  ;;  %v1944_v38 = vpack.i.bf16 %v152_v36, %v168_v37  ;;  %v153_v39 = vld [vmem:[%s2833_s3 + $0x58] sm:$0xff]  ;;  %v154_v42 = vld [vmem:[%s2833_s3 + $0x60] sm:$0xff]  ;;  %v155_v45 = vld [vmem:[%s2833_s3 + $0x68] sm:$0xff]  ;;  %v654_v17 = vsub.s32 3, %v2480_v13 }
  0x34   :  { %1929 = vxpose.xlu0.b32.cont [3/16] (narrow) %v1928_v14, 8  ;;  %v169_v40 = vld [vmem:[%s2833_s3 + $0xd8] sm:$0xff]  ;;  %v170_v43 = vld [vmem:[%s2833_s3 + $0xe0] sm:$0xff]  ;;  %v171_v46 = vld [vmem:[%s2833_s3 + $0xe8] sm:$0xff]  ;;  %v536_v14 = vsub.s32 2, %v2480_v13  ;;  %v522_v30 = vsub.s32 0, %v2480_v13 }
  0x35   :  { %v1946_v41 = vpack.i.bf16 %v153_v39, %v169_v40  ;;  %v1948_v44 = vpack.i.bf16 %v154_v42, %v170_v43  ;;  %v1950_v47 = vpack.i.bf16 %v155_v45, %v171_v46  ;;  %v156_v48 = vld [vmem:[%s2833_s3 + $0x70] sm:$0xff]  ;;  %v157_v51 = vld [vmem:[%s2833_s3 + $0x78] sm:$0xff]  ;;  %v640_v34 = vsub.s32 1, %v2480_v13 }
  0x36   :  { %1873 = vmatpush3.bf16.msra.mxu1 %v1872_v7  ;;  %v172_v49 = vld [vmem:[%s2833_s3 + $0xf0] sm:$0xff]  ;;  %v173_v52 = vld [vmem:[%s2833_s3 + $0xf8] sm:$0xff]  ;;  %s2097_s3 = smov 16  }
  0x37   :  { %1732 = vmatprep.subr.bf16.mxu1 %v2093_v11  ;;  %v1952_v50 = vpack.i.bf16 %v156_v48, %v172_v49  ;;  %v1954_v53 = vpack.i.bf16 %v157_v51, %v173_v52 }
  0x38   :  { %1931 = vxpose.xlu0.b32.cont [4/16] (narrow) %v1930_v18, 8 }
  0x3c   :  { %1933 = vxpose.xlu0.b32.cont [5/16] (narrow) %v1932_v20, 8 }
  0x40   :  { %1935 = vxpose.xlu0.b32.cont [6/16] (narrow) %v1934_v23, 8 }
  0x44   :  { %1937 = vxpose.xlu0.b32.cont [7/16] (narrow) %v1936_v26, 8 }
  0x48   :  { %1939 = vxpose.xlu0.b32.cont [8/16] (narrow) %v1938_v29, 8  ;;  %v1644_v29 = vld [vmem:[%s2835_s1] sm:$0xf]  }
  0x49   :  { %v1645_v31 = vunpack.c.0.s8 %v1644_v29  ;;  %v1646_v43 = vunpack.c.1.s8 %v1644_v29 }
  0x4b   :  { %v2505_v49 = vcvt.s32.f32 %v1646_v43  ;;  %v828_v43 = vld [vmem:[%s2807_s10 + $0x8] sm:$0xff] }
  0x4c   :  { %1941 = vxpose.xlu0.b32.cont [9/16] (narrow) %v1940_v32, 8 }
  0x4d   :  { %vm558_vm6 = vcmp.gt.f32.partialorder %v2505_v49, 0.5 }
  0x50   :  { %1943 = vxpose.xlu0.b32.cont [10/16] (narrow) %v1942_v35, 8  ;;  %v2495_v35 = vcvt.s32.f32 %v1645_v31 }
  0x52   :  { %vm557_vm2 = vcmp.gt.f32.partialorder %v2495_v35, 0.5 }
  0x54   :  { %1945 = vxpose.xlu0.b32.cont [11/16] (narrow) %v1944_v38, 8 }
  0x58   :  { %1947 = vxpose.xlu0.b32.cont [12/16] (narrow) %v1946_v41, 8 }
  0x5c   :  { %1949 = vxpose.xlu0.b32.cont [13/16] (narrow) %v1948_v44, 8 }
  0x60   :  { %1951 = vxpose.xlu0.b32.cont [14/16] (narrow) %v1950_v47, 8 }
  0x64   :  { %1953 = vxpose.xlu0.b32.cont [15/16] (narrow) %v1952_v50, 8 }
  0x68   :  { %1955 = vxpose.xlu0.b32.end [16/16] (narrow) %v1954_v53, 8 }
  0x91   :  { %1969 = vset.pattern.permute.xlu0 %v2095_v0 }
  0xac   :  { %v1956_v55 = vpop.trf.xlu0 }
  0xad   :  { %v1957_v57 = vunpack.i.l.bf16 %v1956_v55  ;;  %v1960_v62 = vunpack.i.h.bf16 %v1956_v55 }
  0xaf   :  { %502 = vmatprep.mubr.f32.mxu0 %v1957_v57 }
 0x102   :  { %v290_v54 = vpop.f32.mrb[0].mxu0 }
 0x103   :  { %v292_v56 = vpop.f32.mrb[1].mxu0 }
 0x104   :  { %v294_v58 = vpop.f32.mrb[2].mxu0  ;;  %363 = vmatprep.mubr.f32.mxu1 %v292_v56 }
 0x105   :  { %v2466_v59 = vpack.c.bf16 %v294_v58, %v290_v54  ;;  %v296_v60 = vpop.f32.mrb[3].mxu0  ;;  %364 = vmatmul.mubr.f32.vlgmr.msra.gmra.mrb[0].mxu1 %v290_v54 }
 0x106   :  { %v2468_v61 = vpack.c.bf16 %v296_v60, %v292_v56  ;;  %368 = vmatprep.mubr.f32.mxu1 %v296_v60 }
 0x107   :  { %1733 = vmatpush3.bf16.msra.mxu1 %v2466_v59 }
 0x108   :  { %1875 = vmatprep.subr.bf16.mxu0 %v2468_v61  ;;  %1734 = vmatprep.subr.bf16.mxu1 %v2093_v11 }
 0x109   :  { %369 = vmatmul.mubr.f32.gmra.mrb[2].mxu1 %v294_v58  ;;  %1877 = vmatpush1.bf16.xpose.msra.mxu0 %v2466_v59 }
 0x10a   :  { %1740 = vmatprep.subr.bf16.mxu0 %v2093_v11  ;;  %1736 = vmatprep.mubr.msk.bf16.mxu1 %vm2099_vm8, %v2093_v11 }
 0x10b   :  { %1735 = vmatpush3.bf16.msra.mxu1 %v2468_v61 }
 0x10c   :  { %1748 = vmatprep.subr.bf16.mxu1 %v2093_v11 }
 0x110   :  { %503 = vmatmul.mubr.f32.vlgmr.msra.gmra.mrb[4].mxu0 %v1960_v62 }
 0x111   :  { %1744 = vmatprep.mubr.msk.bf16.mxu0 %vm2099_vm8, %v2093_v11 }
 0x1d8   :  { %v1679_v1 = vpop.f32.mrb[0].mxu1 }
 0x1d9   :  { %v1680_v3 = vpop.f32.mrb[1].mxu1 }
 0x1da   :  { %v1681_v4 = vadd.f32 %v1680_v3, %v1679_v1 }
 0x1dc   :  { %527 = vperm.xlu1 %1961, %v1681_v4   ;;  %v1682_v5 = vpop.f32.mrb[2].mxu1 }
 0x1dd   :  { %v1683_v6 = vpop.f32.mrb[3].mxu1 }
 0x1de   :  { %v1684_v7 = vadd.f32 %v1683_v6, %v1682_v5 }
 0x1e0   :  { %1962 = vset.pattern.permute.xlu1 %v2096_v8 }
 0x1e1   :  { %645 = vperm.xlu1 %1962, %v1681_v4  }
 0x1e3   :  { %v504_v9 = vpop.f32.mrb[4].mxu0 }
 0x1e4   :  { %v506_v10 = vpop.f32.mrb[5].mxu0  ;;  %v537_v15 = vrot.slane %v504_v9, %v536_v14  ;;  %v655_v19 = vrot.slane %v504_v9, %v654_v17  ;;  %v523_v33 = vrot.slane %v504_v9, %v522_v30  ;;  %v641_v39 = vrot.slane %v504_v9, %v640_v34 }
 0x1e5   :  { %1963 = vset.pattern.permute.xlu1 %v2094_v63 }
 0x1e6   :  { %531 = vperm.xlu1 %1963, %v1684_v7  }
 0x1ea   :  { %1964 = vset.pattern.permute.xlu1 %v2096_v8 }
 0x1eb   :  { %649 = vperm.xlu1 %1964, %v1684_v7  }
 0x1ef   :  { %1965 = vset.pattern.permute.xlu1 %v2092_v2 }
 0x1f0   :  { %512 = vperm.xlu1 %1965, %v1681_v4  }
 0x1f4   :  { %1966 = vset.pattern.permute.xlu1 %v2095_v0 }
 0x1f5   :  { %631 = vperm.xlu1 %1966, %v1681_v4  }
 0x1f9   :  { %1967 = vset.pattern.permute.xlu1 %v2092_v2 }
 0x1fa   :  { %517 = vperm.xlu1 %1967, %v1684_v7  }
 0x1fe   :  { %1968 = vset.pattern.permute.xlu1 %v2095_v0 }
 0x1ff   :  { %635 = vperm.xlu1 %1968, %v1684_v7  }
 0x25b   :  { %v528_v16 = vpop.permute.xlu1 %527 }
 0x25c   :  { %v538_v18 = vadd.f32 %v537_v15, %v528_v16 }
 0x25e   :  { %542 = vrot.lane.b32.xlu1 %v538_v18, %s2097_s3 }
 0x260   :  { %v646_v20 = vpop.permute.xlu1 %645 }
 0x261   :  { %v656_v21 = vadd.f32 %v655_v19, %v646_v20 }
 0x263   :  { %660 = vrot.lane.b32.xlu1 %v656_v21, %s2097_s3 }
 0x265   :  { %v532_v22 = vpop.permute.xlu1 %531 }
 0x266   :  { %v539_v23 = vadd.f32 %v537_v15, %v532_v22 }
 0x268   :  { %544 = vrot.lane.b32.xlu1 %v539_v23, %s2097_s3 }
 0x26a   :  { %v650_v24 = vpop.permute.xlu1 %649 }
 0x26b   :  { %v657_v25 = vadd.f32 %v655_v19, %v650_v24 }
 0x26d   :  { %662 = vrot.lane.b32.xlu1 %v657_v25, %s2097_s3 }
 0x26f   :  { %v513_v26 = vpop.permute.xlu1 %512 }
 0x270   :  { %v524_v36 = vadd.f32 %v523_v33, %v513_v26 }
 0x274   :  { %v632_v27 = vpop.permute.xlu1 %631 }
 0x275   :  { %v642_v41 = vadd.f32 %v641_v39, %v632_v27 }
 0x279   :  { %v518_v28 = vpop.permute.xlu1 %517 }
 0x27a   :  { %v525_v50 = vadd.f32 %v523_v33, %v518_v28  ;;  %v83_v33 = vsel %vm79_vm3, %v2505_v49, 0.0 }
 0x27e   :  { %v636_v32 = vpop.permute.xlu1 %635 }
 0x27f   :  { %v643_v57 = vadd.f32 %v641_v39, %v636_v32  ;;  %v80_v32 = vsel %vm79_vm3, %v2495_v35, 0.0  ;;  %v2004_v39 = vld [vmem:[%s2806_s9 + $0x18] sm:$0xff]  }
 0x2d0   :  { %v543_v37 = vpop.permute.xlu1 %542 }
 0x2d1   :  { %v549_v38 = vsel %vm548_vm0, %v524_v36, %v543_v37  ;;  %v2001_v36 = vld [vmem:[%s2806_s9] sm:$0xff]   ;;  %v2002_v37 = vld [vmem:[%s2806_s9 + $0x8] sm:$0xff]  }
 0x2d2   :  { %vm551_vm1 = vcmp.ge.f32.partialorder %v549_v38, 0.0  ;;  %v553_v40 = vmul.f32 0.2, %v549_v38 }
 0x2d4   :  { %v555_v42 = vsel %vm551_vm1, %v549_v38, %v553_v40  ;;  %v2003_v38 = vld [vmem:[%s2806_s9 + $0x10] sm:$0xff]   ;;  %v843_v40 = vld [vmem:[%s2808_s11] sm:$0xff] }
 0x2d5   :  { %v661_v44 = vpop.permute.xlu1 %660  ;;  %v559_v45 = vsel %vm557_vm2, %v555_v42, -1e+30  ;;  %v827_v42 = vld [vmem:[%s2807_s10] sm:$0xff] }
 0x2d6   :  { %v666_v46 = vsel %vm548_vm0, %v642_v41, %v661_v44  ;;  %v561_v47 = vsel %vm79_vm3, %v559_v45, -inf  ;;  %v844_v41 = vld [vmem:[%s2808_s11 + $0x8] sm:$0xff]  ;;  %v845_v44 = vld [vmem:[%s2808_s11 + $0x10] sm:$0xff] }
 0x2d7   :  { %vm668_vm4 = vcmp.ge.f32.partialorder %v666_v46, 0.0  ;;  %v670_v48 = vmul.f32 0.2, %v666_v46  ;;  %562 = vmax.xlane.f32.xlu1 %v561_v47  ;;  %v830_v47 = vld [vmem:[%s2807_s10 + $0x18] sm:$0xff] }
 0x2d9   :  { %v672_v51 = vsel %vm668_vm4, %v666_v46, %v670_v48  ;;  %v829_v46 = vld [vmem:[%s2807_s10 + $0x10] sm:$0xff] }
 0x2da   :  { %v545_v52 = vpop.permute.xlu1 %544  ;;  %v674_v53 = vsel %vm557_vm2, %v672_v51, -1e+30  ;;  %v1882_v48 = vpack.c.bf16 %v830_v47, %v829_v46  ;;  %v832_v51 = vld [vmem:[%s2807_s10 + $0x28] sm:$0xff] }
 0x2db   :  { %v550_v54 = vsel %vm548_vm0, %v525_v50, %v545_v52  ;;  %v676_v55 = vsel %vm79_vm3, %v674_v53, -inf  ;;  %v831_v50 = vld [vmem:[%s2807_s10 + $0x20] sm:$0xff]  ;;  %v846_v52 = vld [vmem:[%s2808_s11 + $0x18] sm:$0xff] }
 0x2dc   :  { %vm552_vm5 = vcmp.ge.f32.partialorder %v550_v54, 0.0  ;;  %v554_v56 = vmul.f32 0.2, %v550_v54  ;;  %677 = vmax.xlane.f32.xlu1 %v676_v55  ;;  %v834_v55 = vld [vmem:[%s2807_s10 + $0x38] sm:$0xff] }
 0x2de   :  { %v556_v58 = vsel %vm552_vm5, %v550_v54, %v554_v56  ;;  %v833_v54 = vld [vmem:[%s2807_s10 + $0x30] sm:$0xff]  ;;  %v847_v56 = vld [vmem:[%s2808_s11 + $0x20] sm:$0xff] }
 0x2df   :  { %v663_v60 = vpop.permute.xlu1 %662  ;;  %v560_v62 = vsel %vm558_vm6, %v556_v58, -1e+30  ;;  %v835_v58 = vld [vmem:[%s2807_s10 + $0x40] sm:$0xff] }
 0x2e0   :  { %v667_v63 = vsel %vm548_vm0, %v643_v57, %v663_v60  ;;  %v564_v0 = vsel %vm79_vm3, %v560_v62, -inf  ;;  %v1890_v57 = vpack.c.bf16 %v834_v55, %v833_v54  ;;  %v836_v60 = vld [vmem:[%s2807_s10 + $0x48] sm:$0xff]  ;;  %v1617_v54 = vld [vmem:[%s2836_s29] ss:$0 sm:$0xff] }
 0x2e1   :  { %vm669_vm7 = vcmp.ge.f32.partialorder %v667_v63, 0.0  ;;  %v671_v1 = vmul.f32 0.2, %v667_v63  ;;  %565 = vmax.xlane.f32.xlu0 %v564_v0  ;;  %v837_v0 = vld [vmem:[%s2807_s10 + $0x50] sm:$0xff] }
 0x2e3   :  { %v673_v3 = vsel %vm669_vm7, %v667_v63, %v671_v1  ;;  %v1894_v63 = vpack.c.bf16 %v836_v60, %v835_v58  ;;  %v838_v1 = vld [vmem:[%s2807_s10 + $0x58] sm:$0xff] }
 0x2e4   :  { %v675_v4 = vsel %vm558_vm6, %v673_v3, -1e+30  ;;  %v849_v3 = vld [vmem:[%s2808_s11 + $0x30] sm:$0xff] }
 0x2e5   :  { %v679_v5 = vsel %vm79_vm3, %v675_v4, -inf }
 0x2e6   :  { %680 = vmax.xlane.f32.xlu1 %v679_v5  ;;  %v839_v5 = vld [vmem:[%s2807_s10 + $0x60] sm:$0xff] }
 0x2f7   :  { %703 = vrot.lane.b32.xlu0 %v2468_v61, %s2098_s6  ;;  %701 = vrot.lane.b32.xlu1 %v2466_v59, %s2098_s6 }
 0x364   :  { %v563_v6 = vpop.xlane.xlu1 %562 }
 0x365   :  { %v567_v7 = vsub.f32 %v559_v45, %v563_v6  ;;  %v1878_v45 = vpack.c.bf16 %v828_v43, %v827_v42  ;;  %v840_v6 = vld [vmem:[%s2807_s10 + $0x68] sm:$0xff] }
 0x367   :  { %v569_v8 = vmul.f32 1.442695, %v567_v7 }
 0x369   :  { %2012 = vpow2.f32 %v569_v8  ;;  %v678_v9 = vpop.xlane.xlu1 %677  ;;  %v850_v8 = vld [vmem:[%s2808_s11 + $0x38] sm:$0xff] }
 0x36a   :  { %v682_v10 = vsub.f32 %v674_v53, %v678_v9  ;;  %v1886_v53 = vpack.c.bf16 %v832_v51, %v831_v50  ;;  %v1902_v9 = vpack.c.bf16 %v840_v6, %v839_v5 }
 0x36c   :  { %v684_v14 = vmul.f32 1.442695, %v682_v10  ;;  %v841_v10 = vld [vmem:[%s2807_s10 + $0x70] sm:$0xff] }
 0x36e   :  { %2014 = vpow2.f32 %v684_v14  ;;  %v566_v15 = vpop.xlane.xlu0 %565  ;;  %v842_v14 = vld [vmem:[%s2807_s10 + $0x78] sm:$0xff] }
 0x36f   :  { %v568_v61 = vsub.f32 %v560_v62, %v566_v15  ;;  %v848_v62 = vld [vmem:[%s2808_s11 + $0x28] sm:$0xff]  ;;  %v851_v15 = vld [vmem:[%s2808_s11 + $0x40] sm:$0xff] }
 0x371   :  { %v571_v16 = vmul.f32 1.442695, %v568_v61  ;;  %v1906_v61 = vpack.c.bf16 %v842_v14, %v841_v10 }
 0x372   :  { %v704_v24 = vpop.permute.xlu0 %703 }
 0x373   :  { %v2013_v17 = vpop.eup %2012  ;;  %2016 = vpow2.f32 %v571_v16  ;;  %v681_v59 = vpop.xlane.xlu1 %680 }
 0x374   :  { %v683_v18 = vsub.f32 %v675_v4, %v681_v59  ;;  %v573_v19 = vsel %vm79_vm3, %v2013_v17, 0.0  ;;  %v1898_v4 = vpack.c.bf16 %v838_v1, %v837_v0 }
 0x375   :  { %574 = vadd.xlane.f32.xlu1 %v573_v19 }
 0x376   :  { %v686_v20 = vmul.f32 1.442695, %v683_v18  ;;  %v853_v18 = vld [vmem:[%s2808_s11 + $0x50] sm:$0xff] }
 0x377   :  { %v702_v21 = vpop.permute.xlu1 %701 }
 0x378   :  { %v2015_v22 = vpop.eup %2014  ;;  %2018 = vpow2.f32 %v686_v20  ;;  %1741 = vmatpush3.bf16.msra.mxu0 %v702_v21  ;;  %v854_v21 = vld [vmem:[%s2808_s11 + $0x58] sm:$0xff] }
 0x379   :  { %v688_v23 = vsel %vm79_vm3, %v2015_v22, 0.0  ;;  %1742 = vmatprep.subr.bf16.mxu0 %v2093_v11 }
 0x37a   :  { %689 = vadd.xlane.f32.xlu1 %v688_v23 }
 0x37c   :  { %1743 = vmatpush3.bf16.msra.mxu0 %v704_v24 }
 0x37d   :  { %v2017_v25 = vpop.eup %2016  ;;  %1879 = vmatprep.subr.bf16.mxu0 %v1878_v45 }
 0x37e   :  { %v583_v26 = vpack.c.bf16 %v2017_v25, %v2013_v17  ;;  %v576_v27 = vsel %vm79_vm3, %v2017_v25, 0.0  ;;  %v852_v17 = vld [vmem:[%s2808_s11 + $0x48] sm:$0xff] }
 0x37f   :  { %577 = vadd.xlane.f32.xlu0 %v576_v27  ;;  %v856_v25 = vld [vmem:[%s2808_s11 + $0x68] sm:$0xff] }
 0x380   :  { %1737 = vmatmul.mubr.msk.bf16.vlgmr.msra.gmra.mrb[4].mxu1 %vm79_vm3, %v583_v26 }
 0x381   :  { %1756 = vmatprep.mubr.msk.bf16.mxu1 %vm2099_vm8, %v2093_v11  ;;  %1749 = vmatpush3.bf16.msra.mxu1 %v2001_v36 }
 0x382   :  { %v2019_v28 = vpop.eup %2018  ;;  %1750 = vmatprep.subr.bf16.mxu1 %v2093_v11 }
 0x383   :  { %v691_v29 = vsel %vm79_vm3, %v2019_v28, 0.0  ;;  %v698_v31 = vpack.c.bf16 %v2019_v28, %v2015_v22  ;;  %v855_v22 = vld [vmem:[%s2808_s11 + $0x60] sm:$0xff] }
 0x384   :  { %692 = vadd.xlane.f32.xlu1 %v691_v29 }
 0x385   :  { %1745 = vmatmul.mubr.msk.bf16.vlgmr.msra.gmra.mrb[8].mxu0 %vm79_vm3, %v698_v31  ;;  %1751 = vmatpush3.bf16.msra.mxu1 %v2002_v37 }
 0x386   :  { %1752 = vmatprep.subr.bf16.mxu1 %v2093_v11  ;;  %1881 = vmatpush3.bf16.msra.mxu0 %v1878_v45 }
 0x387   :  { %1883 = vmatprep.subr.bf16.mxu0 %v1882_v48 }
 0x388   :  { %81 = vadd.xlane.f32.xlu1 %v80_v32 }
 0x389   :  { %1753 = vmatpush3.bf16.msra.mxu1 %v2003_v38 }
 0x38a   :  { %1754 = vmatprep.subr.bf16.mxu1 %v2093_v11  ;;  %1885 = vmatpush3.bf16.msra.mxu0 %v1882_v48 }
 0x38b   :  { %1887 = vmatprep.subr.bf16.mxu0 %v1886_v53 }
 0x38c   :  { %84 = vadd.xlane.f32.xlu1 %v83_v33 }
 0x38d   :  { %1755 = vmatpush3.bf16.msra.mxu1 %v2004_v39  ;;  %v857_v39 = vld [vmem:[%s2808_s11 + $0x70] sm:$0xff] }
 0x38e   :  { %1889 = vmatpush3.bf16.msra.mxu0 %v1886_v53  ;;  %v858_v53 = vld [vmem:[%s2808_s11 + $0x78] sm:$0xff] }
 0x38f   :  { %1891 = vmatprep.subr.bf16.mxu0 %v1890_v57 }
 0x392   :  { %1893 = vmatpush3.bf16.msra.mxu0 %v1890_v57 }
 0x393   :  { %1895 = vmatprep.subr.bf16.mxu0 %v1894_v63 }
 0x396   :  { %1897 = vmatpush3.bf16.msra.mxu0 %v1894_v63 }
 0x397   :  { %1899 = vmatprep.subr.bf16.mxu0 %v1898_v4 }
 0x39a   :  { %1901 = vmatpush3.bf16.msra.mxu0 %v1898_v4 }
 0x39b   :  { %1903 = vmatprep.subr.bf16.mxu0 %v1902_v9 }
 0x39e   :  { %1905 = vmatpush3.bf16.msra.mxu0 %v1902_v9 }
 0x39f   :  { %1907 = vmatprep.subr.bf16.mxu0 %v1906_v61 }
 0x3a2   :  { %1909 = vmatpush3.bf16.msra.mxu0 %v1906_v61 }
 0x3a3   :  { %1816 = vmatprep.subr.bf16.mxu0 %v2093_v11 }
 0x3bf   :  { %1004 = vxpose.xlu1.b32.start [1/16] (narrow) %v843_v40, 8 }
 0x3c3   :  { %1005 = vxpose.xlu1.b32.cont [2/16] (narrow) %v844_v41, 8 }
 0x3c7   :  { %1006 = vxpose.xlu1.b32.cont [3/16] (narrow) %v845_v44, 8 }
 0x3cb   :  { %1007 = vxpose.xlu1.b32.cont [4/16] (narrow) %v846_v52, 8 }
 0x3cf   :  { %1008 = vxpose.xlu1.b32.cont [5/16] (narrow) %v847_v56, 8 }
 0x3d3   :  { %1009 = vxpose.xlu1.b32.cont [6/16] (narrow) %v848_v62, 8 }
 0x3d7   :  { %1010 = vxpose.xlu1.b32.cont [7/16] (narrow) %v849_v3, 8 }
 0x3db   :  { %1011 = vxpose.xlu1.b32.cont [8/16] (narrow) %v850_v8, 8 }
 0x3df   :  { %1012 = vxpose.xlu1.b32.cont [9/16] (narrow) %v851_v15, 8 }
 0x3e3   :  { %1013 = vxpose.xlu1.b32.cont [10/16] (narrow) %v852_v17, 8 }
 0x3e7   :  { %1014 = vxpose.xlu1.b32.cont [11/16] (narrow) %v853_v18, 8 }
 0x3eb   :  { %1015 = vxpose.xlu1.b32.cont [12/16] (narrow) %v854_v21, 8 }
 0x3ef   :  { %1016 = vxpose.xlu1.b32.cont [13/16] (narrow) %v855_v22, 8 }
 0x3f3   :  { %1017 = vxpose.xlu1.b32.cont [14/16] (narrow) %v856_v25, 8 }
 0x3f7   :  { %1018 = vxpose.xlu1.b32.cont [15/16] (narrow) %v857_v39, 8 }
 0x3fb   :  { %1019 = vxpose.xlu1.b32.end [16/16] (narrow) %v858_v53, 8 }
 0x402   :  { %v575_v7 = vpop.xlane.xlu1 %574 }
 0x403   :  { %2020 = vrcp.f32 %v575_v7 }
 0x407   :  { %v690_v16 = vpop.xlane.xlu1 %689 }
 0x408   :  { %2022 = vrcp.f32 %v690_v16 }
 0x40c   :  { %v578_v20 = vpop.xlane.xlu0 %577 }
 0x40d   :  { %v2021_v26 = vpop.eup %2020 }
 0x411   :  { %v693_v59 = vpop.xlane.xlu1 %692 }
 0x412   :  { %2024 = vrcp.f32 %v693_v59  ;;  %v2023_v29 = vpop.eup %2022 }
 0x413   :  { %2026 = vrcp.f32 %v578_v20 }
 0x415   :  { %v82_v19 = vpop.xlane.xlu1 %81 }
 0x416   :  { %vm86_vm9 = vcmp.gt.f32.partialorder %v82_v19, 0.0 }
 0x417   :  { %v2647_v27 = vsel %vm86_vm9, 1.0, %v2093_v11 }
 0x418   :  { %v581_v37 = vmul.f32 %v2021_v26, %v2647_v27  ;;  %v696_v38 = vmul.f32 %v2023_v29, %v2647_v27 }
 0x419   :  { %v85_v23 = vpop.xlane.xlu1 %84  ;;  %1976 = vset.pattern.permute.xlu1 %v2092_v2 }
 0x41a   :  { %vm87_vm10 = vcmp.gt.f32.partialorder %v85_v23, 0.0 }
 0x41b   :  { %v2650_v33 = vsel %vm87_vm10, 1.0, %v2093_v11 }
 0x41c   :  { %v2025_v32 = vpop.eup %2024 }
 0x41d   :  { %v2027_v40 = vpop.eup %2026  ;;  %v697_v46 = vmul.f32 %v2025_v32, %v2650_v33  ;;  %v1618_v32 = vld [vmem:[%s2804_s7] ss:$0 sm:$0xff] }
 0x41e   :  { %v582_v43 = vmul.f32 %v2027_v40, %v2650_v33 }
 0x453   :  { %v621_v24 = vpop.f32.mrb[4].mxu1 }
 0x454   :  { %v1738_v28 = vpop.f32.mrb[5].mxu1  ;;  %v628_v42 = vmul.f32 %v621_v24, %v581_v37 }
 0x455   :  { %v624_v31 = vpop.f32.mrb[6].mxu1 }
 0x456   :  { %v1739_v36 = vpop.f32.mrb[7].mxu1  ;;  %v629_v48 = vmul.f32 %v624_v31, %v582_v43 }
 0x458   :  { %v744_v41 = vpop.f32.mrb[8].mxu0 }
 0x459   :  { %v751_v44 = vmul.f32 %v744_v41, %v696_v38  ;;  %v1746_v45 = vpop.f32.mrb[9].mxu0  ;;  %v1619_v38 = vld [vmem:[%s2805_s8] ss:$0 sm:$0xff] }
 0x45a   :  { %v747_v47 = vpop.f32.mrb[10].mxu0 }
 0x45b   :  { %v753_v50 = vadd.f32 %v751_v44, %v628_v42  ;;  %v752_v51 = vmul.f32 %v747_v47, %v697_v46  ;;  %v1747_v52 = vpop.f32.mrb[11].mxu0  ;;  %v2100_v44 = vmov 0.0|0.0  }
 0x45c   :  { %1910 = vmatprep.subr.bf16.mxu1 %v2100_v44  ;;  %v1020_v52 = vpop.trf.xlu1 }
 0x45d   :  { %v755_v55 = vmul.f32 0.5, %v753_v50  ;;  %v754_v56 = vadd.f32 %v752_v51, %v629_v48 }
 0x45f   :  { %v763_v57 = vadd.f32 %v1617_v54, %v755_v55  ;;  %v756_v58 = vmul.f32 0.5, %v754_v56 }
 0x461   :  { %vm765_vm11 = vcmp.ge.f32.partialorder %v763_v57, 0.0  ;;  %v767_v60 = vmul.f32 0.01, %v763_v57  ;;  %v764_v62 = vadd.f32 %v1617_v54, %v756_v58 }
 0x463   :  { %v769_v63 = vsel %vm765_vm11, %v763_v57, %v767_v60  ;;  %vm766_vm13 = vcmp.ge.f32.partialorder %v764_v62, 0.0  ;;  %v768_v0 = vmul.f32 0.01, %v764_v62 }
 0x464   :  { %v774_v3 = vsel %vm773_vm12, %v769_v63, 0.0 }
 0x465   :  { %v770_v1 = vsel %vm766_vm13, %v764_v62, %v768_v0 }
 0x466   :  { %v775_v4 = vsel %vm773_vm12, %v770_v1, 0.0 }
 0x467   :  { %v776_v5 = vadd.f32 %v775_v4, %v774_v3 }
 0x469   :  { %v777_v6 = vrot.slane %v776_v5, 4 }
 0x46b   :  { %v778_v7 = vadd.f32 %v777_v6, %v776_v5 }
 0x46d   :  { %v779_v8 = vrot.slane %v778_v7, 2 }
 0x46f   :  { %v780_v9 = vadd.f32 %v779_v8, %v778_v7 }
 0x471   :  { %v781_v10 = vrot.slane %v780_v9, 1 }
 0x473   :  { %v782_v14 = vadd.f32 %v781_v10, %v780_v9 }
 0x475   :  { %v784_v15 = vmul.f32 0.0625, %v782_v14 }
 0x477   :  { %v785_v61 = vsub.f32 %v769_v63, %v784_v15  ;;  %v786_v16 = vsub.f32 %v770_v1, %v784_v15 }
 0x479   :  { %v787_v17 = vmul.f32 %v785_v61, %v785_v61  ;;  %v788_v59 = vmul.f32 %v786_v16, %v786_v16 }
 0x47b   :  { %v789_v18 = vsel %vm773_vm12, %v787_v17, 0.0  ;;  %v790_v19 = vsel %vm773_vm12, %v788_v59, 0.0 }
 0x47c   :  { %v791_v20 = vadd.f32 %v790_v19, %v789_v18 }
 0x47e   :  { %v792_v21 = vrot.slane %v791_v20, 4 }
 0x480   :  { %v793_v22 = vadd.f32 %v792_v21, %v791_v20 }
 0x482   :  { %v794_v23 = vrot.slane %v793_v22, 2 }
 0x484   :  { %v795_v24 = vadd.f32 %v794_v23, %v793_v22 }
 0x486   :  { %v796_v25 = vrot.slane %v795_v24, 1 }
 0x488   :  { %v797_v26 = vadd.f32 %v796_v25, %v795_v24 }
 0x48a   :  { %v798_v28 = vmul.f32 0.0625, %v797_v26 }
 0x48c   :  { %v799_v29 = vadd.f32 1e-05, %v798_v28 }
 0x48e   :  { %2028 = vrsqrt.f32 %v799_v29 }
 0x498   :  { %v2029_v31 = vpop.eup %2028 }
 0x499   :  { %v801_v36 = vmul.f32 %v2029_v31, %v785_v61  ;;  %v802_v37 = vmul.f32 %v2029_v31, %v786_v16  ;;  %v2005_v31 = vld [vmem:[%s2812_s15] sm:$0xff]  }
 0x49b   :  { %v810_v39 = vmul.f32 %v1618_v32, %v802_v37  ;;  %v809_v40 = vmul.f32 %v1618_v32, %v801_v36  ;;  %v2006_v32 = vld [vmem:[%s2812_s15 + $0x8] sm:$0xff]   ;;  %v2007_v36 = vld [vmem:[%s2812_s15 + $0x10] sm:$0xff]  }
 0x49d   :  { %v817_v41 = vadd.f32 %v1619_v38, %v809_v40  ;;  %v818_v42 = vadd.f32 %v1619_v38, %v810_v39 }
 0x49f   :  { %v860_v43 = vpack.c.bf16 %v818_v42, %v817_v41  ;;  %v1626_v42 = vld [vmem:[%s2809_s12] ss:$0 sm:$0xff] }
 0x4a1   :  { %1757 = vmatmul.mubr.msk.bf16.vlgmr.msra.gmra.mrb[8].mxu1 %vm773_vm12, %v860_v43 }
 0x4a2   :  { %1799 = vmatprep.mubr.msk.f32.mxu1 %vm2099_vm8, %v2093_v11 }
 0x574   :  { %v922_v45 = vpop.f32.mrb[8].mxu1 }
 0x575   :  { %v1758_v46 = vpop.f32.mrb[9].mxu1  ;;  %1792 = vmatprep.mubr.f32.mxu0 %v922_v45 }
 0x576   :  { %v925_v47 = vpop.f32.mrb[10].mxu1 }
 0x577   :  { %v1971_v48 = vpack.i.bf16 %v925_v47, %v922_v45  ;;  %v1911_v50 = vpack.c.bf16 %v925_v47, %v922_v45  ;;  %v1759_v51 = vpop.f32.mrb[11].mxu1  ;;  %1793 = vmatmul.mubr.f32.vlgmr.msra.gmra.mrb[6].mxu0 %v925_v47 }
 0x578   :  { %1824 = vmatprep.mubr.msk.bf16.mxu0 %vm2099_vm8, %v2093_v11  ;;  %1817 = vmatpush3.bf16.msra.mxu0 %v2005_v31 }
 0x579   :  { %1912 = vmatpush3.bf16.xpose.msra.mxu1 %v1911_v50  ;;  %1818 = vmatprep.subr.bf16.mxu0 %v2093_v11 }
 0x57a   :  { %1802 = vmatprep.subr.bf16.mxu1 %v2093_v11 }
 0x57c   :  { %1819 = vmatpush3.bf16.msra.mxu0 %v2006_v32 }
 0x57d   :  { %1820 = vmatprep.subr.bf16.mxu0 %v2093_v11 }
 0x580   :  { %1800 = vmatmul.mubr.f32.vlgmr.msra.gmra.mrb[12].mxu1 %v1020_v52  ;;  %1821 = vmatpush3.bf16.msra.mxu0 %v2007_v36 }
 0x581   :  { %1803 = vmatpush3.bf16.msra.mxu1 %v1911_v50  ;;  %1806 = vmatprep.mubr.msk.bf16.mxu1 %vm2099_vm8, %v2093_v11 }
 0x582   :  { %1804 = vmatprep.subr.bf16.mxu1 %v2093_v11  ;;  %1822 = vmatprep.subr.bf16.mxu0 %v2093_v11 }
 0x64a   :  { %v1794_v53 = vpop.f32.mrb[6].mxu0 }
 0x64b   :  { %v995_v54 = vpop.f32.mrb[7].mxu0 }
 0x64c   :  { %1133 = vperm.xlu0 %1969, %v995_v54  }
 0x650   :  { %1137 = vperm.xlu0 %1969, %v1794_v53  }
 0x653   :  { %v1102_v55 = vpop.f32.mrb[12].mxu1 }
 0x654   :  { %1970 = vset.pattern.permute.xlu0 %v2092_v2  ;;  %v1801_v56 = vpop.f32.mrb[13].mxu1  ;;  %v1143_v57 = vrot.slane %v1102_v55, %v640_v34  ;;  %v1129_v3 = vrot.slane %v1102_v55, %v522_v30 }
 0x655   :  { %1123 = vperm.xlu0 %1970, %v1794_v53  }
 0x659   :  { %1118 = vperm.xlu0 %1970, %v995_v54  }
 0x6cb   :  { %v1134_v58 = vpop.permute.xlu0 %1133 }
 0x6cc   :  { %v1144_v60 = vadd.f32 %v1143_v57, %v1134_v58 }
 0x6ce   :  { %1148 = vrot.lane.b32.xlu0 %v1144_v60, %s2097_s3 }
 0x6cf   :  { %v1138_v62 = vpop.permute.xlu0 %1137 }
 0x6d0   :  { %v1145_v63 = vadd.f32 %v1143_v57, %v1138_v62 }
 0x6d2   :  { %1150 = vrot.lane.b32.xlu0 %v1145_v63, %s2097_s3  ;;  %s2837_s3 = sld [smem:[#allocation10_spill]] }
 0x6d4   :  { %v1124_v0 = vpop.permute.xlu0 %1123 }
 0x6d5   :  { %v1131_v6 = vadd.f32 %v1129_v3, %v1124_v0 }
 0x6d8   :  { %v1119_v1 = vpop.permute.xlu0 %1118  ;;  %v1295_v29 = vld [vmem:[%s2837_s3] sm:$0xff] }
 0x6d9   :  { %v1130_v2 = vadd.f32 %v1129_v3, %v1119_v1 }
 0x740   :  { %v1149_v4 = vpop.permute.xlu0 %1148 }
 0x741   :  { %v1154_v5 = vsel %vm548_vm0, %v1130_v2, %v1149_v4 }
 0x742   :  { %v1158_v7 = vmul.f32 0.2, %v1154_v5  ;;  %vm1156_vm14 = vcmp.ge.f32.partialorder %v1154_v5, 0.0 }
 0x744   :  { %v1151_v34 = vpop.permute.xlu0 %1150  ;;  %v1160_v14 = vsel %vm1156_vm14, %v1154_v5, %v1158_v7 }
 0x745   :  { %v1155_v8 = vsel %vm548_vm0, %v1131_v6, %v1151_v34  ;;  %v1162_v30 = vsel %vm557_vm2, %v1160_v14, -1e+30 }
 0x746   :  { %vm1157_vm15 = vcmp.ge.f32.partialorder %v1155_v8, 0.0  ;;  %v1159_v9 = vmul.f32 0.2, %v1155_v8  ;;  %v1164_v61 = vsel %vm79_vm3, %v1162_v30, -inf }
 0x748   :  { %v1161_v10 = vsel %vm1157_vm15, %v1155_v8, %v1159_v9 }
 0x749   :  { %v1163_v15 = vsel %vm558_vm6, %v1161_v10, -1e+30 }
 0x74a   :  { %v1167_v13 = vsel %vm79_vm3, %v1163_v15, -inf }
 0x74b   :  { %1168 = vmax.xlane.f32.xlu0 %v1167_v13 }
 0x74f   :  { %1165 = vmax.xlane.f32.xlu0 %v1164_v61 }
 0x765   :  { %1972 = vrot.lane.b32.xlu0 %v1971_v48, %s2098_s6 }
 0x7d8   :  { %v1169_v16 = vpop.xlane.xlu0 %1168 }
 0x7d9   :  { %v1171_v17 = vsub.f32 %v1163_v15, %v1169_v16 }
 0x7db   :  { %v1174_v59 = vmul.f32 1.442695, %v1171_v17  ;;  %v1294_v17 = vand.u32 127, %v520_v12 }
 0x7dc   :  { %v1166_v18 = vpop.xlane.xlu0 %1165 }
 0x7dd   :  { %2030 = vpow2.f32 %v1174_v59  ;;  %v1170_v19 = vsub.f32 %v1162_v30, %v1166_v18 }
 0x7df   :  { %v1172_v20 = vmul.f32 1.442695, %v1170_v19  ;;  %v1627_v19 = vld [vmem:[%s2810_s13] ss:$0 sm:$0xff] }
 0x7e0   :  { %v1973_v49 = vpop.permute.xlu0 %1972 }
 0x7e1   :  { %2032 = vpow2.f32 %v1172_v20  ;;  %v1975_v21 = vunpack.i.h.bf16 %v1973_v49  ;;  %v1974_v22 = vunpack.i.l.bf16 %v1973_v49 }
 0x7e3   :  { %v1115_v23 = vpack.c.bf16 %v1975_v21, %v1974_v22  ;;  %v1628_v21 = vld [vmem:[%s2811_s14] ss:$0 sm:$0xff] }
 0x7e5   :  { %1805 = vmatpush3.bf16.msra.mxu1 %v1115_v23 }
 0x7e6   :  { %1810 = vmatprep.subr.bf16.mxu1 %v2093_v11 }
 0x7e7   :  { %v2031_v35 = vpop.eup %2030 }
 0x7e8   :  { %v1179_v24 = vsel %vm79_vm3, %v2031_v35, 0.0 }
 0x7e9   :  { %1180 = vadd.xlane.f32.xlu0 %v1179_v24 }
 0x7eb   :  { %v2033_v25 = vpop.eup %2032 }
 0x7ec   :  { %v1176_v26 = vsel %vm79_vm3, %v2033_v25, 0.0  ;;  %v1186_v28 = vpack.c.bf16 %v2031_v35, %v2033_v25 }
 0x7ed   :  { %1177 = vadd.xlane.f32.xlu1 %v1176_v26 }
 0x7ee   :  { %1807 = vmatmul.mubr.msk.bf16.vlgmr.msra.gmra.mrb[16].mxu1 %vm79_vm3, %v1186_v28  ;;  %v2008_v28 = vld [vmem:[%s2812_s15 + $0x18] sm:$0xff]  }
 0x7ef   :  { %1812 = vmatprep.mubr.msk.bf16.mxu1 %vm2099_vm8, %v2093_v11  ;;  %1823 = vmatpush3.bf16.msra.mxu0 %v2008_v28 }
 0x7fe   :  { %1297 = vperm.xlu1 %1976, %v1295_v29  }
 0x876   :  { %v1181_v38 = vpop.xlane.xlu0 %1180 }
 0x87a   :  { %v1178_v37 = vpop.xlane.xlu1 %1177 }
 0x87b   :  { %2034 = vrcp.f32 %v1178_v37 }
 0x87c   :  { %2036 = vrcp.f32 %v1181_v38  ;;  %v2009_v38 = vld [vmem:[%s2814_s17] sm:$0xff]  }
 0x87e   :  { %v1298_v59 = vpop.permute.xlu1 %1297 }
 0x87f   :  { %vm1299_vm4 = vcmp.eq.s32.totalorder %v1294_v17, %v1298_v59 }
 0x880   :  { %v1300_v35 = vsel %vm1299_vm4, 1.0, %v2093_v11 }
 0x881   :  { %v1301_v26 = vpack.c.bf16 %v1300_v35, %v1300_v35 }
 0x885   :  { %v2035_v39 = vpop.eup %2034 }
 0x886   :  { %v2037_v40 = vpop.eup %2036  ;;  %v1184_v41 = vmul.f32 %v2035_v39, %v2647_v27  ;;  %v2010_v39 = vld [vmem:[%s2814_s17 + $0x8] sm:$0xff]  }
 0x887   :  { %v1185_v46 = vmul.f32 %v2037_v40, %v2650_v33  ;;  %v1630_v40 = vld [vmem:[%s2813_s16] ss:$0 sm:$0xff] }
 0x8c1   :  { %v1224_v43 = vpop.f32.mrb[16].mxu1 }
 0x8c2   :  { %v1231_v44 = vmul.f32 %v1224_v43, %v1184_v41  ;;  %v1808_v45 = vpop.f32.mrb[17].mxu1 }
 0x8c3   :  { %v1227_v47 = vpop.f32.mrb[18].mxu1 }
 0x8c4   :  { %v1239_v48 = vadd.f32 %v1626_v42, %v1231_v44  ;;  %v1232_v50 = vmul.f32 %v1227_v47, %v1185_v46  ;;  %v1809_v51 = vpop.f32.mrb[19].mxu1 }
 0x8c5   :  { %v1636_v51 = vld [vmem:[%s2815_s18] ss:$0 sm:$0xff] }
 0x8c6   :  { %vm1241_vm1 = vcmp.ge.f32.partialorder %v1239_v48, 0.0  ;;  %v1243_v52 = vmul.f32 0.01, %v1239_v48  ;;  %v1240_v53 = vadd.f32 %v1626_v42, %v1232_v50  ;;  %v2011_v50 = vld [vmem:[%s2816_s19] sm:$0xff]   ;;  %s2101_s19 = smov [#allocation2]  }
 0x8c7   :  { %s1575_s6 = sshll.u32 %s2101_s19, 4  ;;  %s1576_s6 = int_to_ptr.vmem [resolvable:$true] %s1575_s6 }
 0x8c8   :  { %v1245_v54 = vsel %vm1241_vm1, %v1239_v48, %v1243_v52  ;;  %vm1242_vm2 = vcmp.ge.f32.partialorder %v1240_v53, 0.0  ;;  %v1244_v55 = vmul.f32 0.01, %v1240_v53  ;;  %s2044_s18 = scalar_lea.vmem %s1576_s6, 128  ;;  %p2049_p1 = scmp.lt.s32.totalorder %s1576_s6, %s1576_s6 }
 0x8c9   :  { %v1249_v56 = vsel %vm773_vm12, %v1245_v54, 0.0  ;;  %p2045_p0 = scmp.ne.s32.totalorder %s1576_s6, %s2044_s18  ;;  %p2050_p2 = scmp.lt.s32.totalorder %s2044_s18, %s2044_s18 }
 0x8ca   :  { %v1246_v27 = vsel %vm1242_vm2, %v1240_v53, %v1244_v55 }
 0x8cb   :  { %v1250_v57 = vsel %vm773_vm12, %v1246_v27, 0.0  ;;  %p2051_p3 = por %p2050_p2, %p2049_p1 }
 0x8cc   :  { %v1251_v58 = vadd.f32 %v1250_v57, %v1249_v56 }
 0x8cd   :  { %p2052_p4 = pnand %p2051_p3, %p2045_p0 }
 0x8ce   :  { %v1252_v60 = vrot.slane %v1251_v58, 4 }
 0x8d0   :  { %v1253_v62 = vadd.f32 %v1252_v60, %v1251_v58 }
 0x8d2   :  { %v1254_v63 = vrot.slane %v1253_v62, 2 }
 0x8d4   :  { %v1255_v33 = vadd.f32 %v1254_v63, %v1253_v62 }
 0x8d6   :  { %v1256_v0 = vrot.slane %v1255_v33, 1 }
 0x8d8   :  { %v1257_v1 = vadd.f32 %v1256_v0, %v1255_v33 }
 0x8da   :  { %v1258_v3 = vmul.f32 0.0625, %v1257_v1 }
 0x8dc   :  { %v1259_v2 = vsub.f32 %v1245_v54, %v1258_v3  ;;  %v1260_v4 = vsub.f32 %v1246_v27, %v1258_v3 }
 0x8de   :  { %v1261_v5 = vmul.f32 %v1259_v2, %v1259_v2  ;;  %v1262_v6 = vmul.f32 %v1260_v4, %v1260_v4 }
 0x8e0   :  { %v1263_v7 = vsel %vm773_vm12, %v1261_v5, 0.0  ;;  %v1264_v34 = vsel %vm773_vm12, %v1262_v6, 0.0 }
 0x8e1   :  { %v1265_v8 = vadd.f32 %v1264_v34, %v1263_v7 }
 0x8e3   :  { %v1266_v9 = vrot.slane %v1265_v8, 4 }
 0x8e5   :  { %v1267_v10 = vadd.f32 %v1266_v9, %v1265_v8 }
 0x8e7   :  { %v1268_v14 = vrot.slane %v1267_v10, 2 }
 0x8e9   :  { %v1269_v15 = vadd.f32 %v1268_v14, %v1267_v10 }
 0x8eb   :  { %v1270_v13 = vrot.slane %v1269_v15, 1 }
 0x8ed   :  { %v1271_v30 = vadd.f32 %v1270_v13, %v1269_v15 }
 0x8ef   :  { %v1272_v61 = vmul.f32 0.0625, %v1271_v30 }
 0x8f1   :  { %v1273_v16 = vadd.f32 1e-05, %v1272_v61 }
 0x8f3   :  { %2038 = vrsqrt.f32 %v1273_v16 }
 0x8fd   :  { %v2039_v18 = vpop.eup %2038 }
 0x8fe   :  { %v1276_v20 = vmul.f32 %v2039_v18, %v1260_v4  ;;  %v1275_v49 = vmul.f32 %v2039_v18, %v1259_v2 }
 0x900   :  { %v1283_v22 = vmul.f32 %v1627_v19, %v1275_v49  ;;  %v1284_v23 = vmul.f32 %v1627_v19, %v1276_v20 }
 0x902   :  { %v1291_v24 = vadd.f32 %v1628_v21, %v1283_v22  ;;  %v1292_v25 = vadd.f32 %v1628_v21, %v1284_v23 }
 0x904   :  { %v1302_v12 = vpack.c.bf16 %v1292_v25, %v1291_v24 }
 0x906   :  { %1811 = vmatpush3.bf16.msra.mxu1 %v1302_v12 }
 0x907   :  { %1828 = vmatprep.subr.bf16.mxu1 %v2093_v11 }
 0x909   :  { %1813 = vmatmul.mubr.msk.bf16.vlgmr.msra.gmra.mrb[20].mxu1 %vm548_vm0, %v1301_v26 }
 0x90a   :  { %1832 = vmatprep.mubr.msk.bf16.mxu1 %vm2099_vm8, %v2093_v11  ;;  %1829 = vmatpush3.bf16.msra.mxu1 %v2009_v38 }
 0x90b   :  { %1830 = vmatprep.subr.bf16.mxu1 %v2093_v11 }
 0x90e   :  { %1831 = vmatpush3.bf16.msra.mxu1 %v2010_v39 }
 0x90f   :  { %1836 = vmatprep.subr.bf16.mxu1 %v2093_v11 }
 0x9dc   :  { %v1340_v29 = vpop.f32.mrb[20].mxu1 }
 0x9dd   :  { %v1346_v31 = vpack.c.bf16 %v1340_v29, %v1340_v29  ;;  %v1814_v32 = vpop.f32.mrb[21].mxu1 }
 0x9de   :  { %v1343_v36 = vpop.f32.mrb[22].mxu1 }
 0x9df   :  { %1825 = vmatmul.mubr.msk.bf16.vlgmr.msra.gmra.mrb[12].mxu0 %vm773_vm12, %v1346_v31  ;;  %v1815_v37 = vpop.f32.mrb[23].mxu1 }
 0xab2   :  { %v1423_v41 = vpop.f32.mrb[12].mxu0 }
 0xab3   :  { %v1424_v42 = vadd.f32 %v1630_v40, %v1423_v41  ;;  %v1826_v43 = vpop.f32.mrb[13].mxu0 }
 0xab4   :  { %v1426_v44 = vpop.f32.mrb[14].mxu0 }
 0xab5   :  { %vm1429_vm5 = vcmp.ge.f32.partialorder %v1424_v42, 0.0  ;;  %v1430_v45 = vmul.f32 0.01, %v1424_v42  ;;  %v1827_v46 = vpop.f32.mrb[15].mxu0 }
 0xab7   :  { %v1431_v47 = vsel %vm1429_vm5, %v1424_v42, %v1430_v45 }
 0xab8   :  { %v1432_v48 = vpack.c.bf16 %v1431_v47, %v1431_v47 }
 0xaba   :  { %1833 = vmatmul.mubr.msk.bf16.vlgmr.msra.gmra.mrb[24].mxu1 %vm79_vm3, %v1432_v48  ;;  %vm1561_vm3 = vcmask 39936  }
 0xabb   :  { %1838 = vmatprep.mubr.msk.bf16.mxu1 %vm2099_vm8, %v2093_v11  ;;  %1837 = vmatpush3.bf16.msra.mxu1 %v2011_v50  ;;  %v1640_v11 = vld [vmem:[%s2817_s20] ss:$0 sm:$0xff] }
 0xb8d   :  { %v1493_v52 = vpop.f32.mrb[24].mxu1 }
 0xb8e   :  { %v1494_v53 = vadd.f32 %v1636_v51, %v1493_v52  ;;  %v1834_v54 = vpop.f32.mrb[25].mxu1 }
 0xb8f   :  { %v1496_v55 = vpop.f32.mrb[26].mxu1 }
 0xb90   :  { %vm1499_vm6 = vcmp.ge.f32.partialorder %v1494_v53, 0.0  ;;  %v1500_v27 = vmul.f32 0.01, %v1494_v53  ;;  %v1835_v56 = vpop.f32.mrb[27].mxu1 }
 0xb92   :  { %v1501_v57 = vsel %vm1499_vm6, %v1494_v53, %v1500_v27 }
 0xb93   :  { %v1502_v58 = vpack.c.bf16 %v1501_v57, %v1501_v57 }
 0xb95   :  { %1839 = vmatmul.mubr.msk.bf16.vlgmr.msra.gmra.mrb[28].mxu1 %vm548_vm0, %v1502_v58 }
 0xc68   :  { %v1555_v60 = vpop.f32.mrb[28].mxu1 }
 0xc69   :  { %v1556_v62 = vadd.f32 %v1640_v11, %v1555_v60  ;;  %v1840_v63 = vpop.f32.mrb[29].mxu1 }
 0xc6a   :  { %v1558_v33 = vpop.f32.mrb[30].mxu1 }
 0xc6b   :  { %v1563_v0 = vsub.f32 0.0, %v1556_v62  ;;  %v1841_v1 = vpop.f32.mrb[31].mxu1  ;;  %1562 = vst.msk [vmem:[#allocation2] sm:$0xff] %vm1561_vm3, %v1556_v62 }
 0xc6c   :  { %2055 = shalt.err (!%p2052_p4)
}
 0xc6d   :  { %s2056_s4 = scalar_lea.hbm %s2818_s21, 128 }
 0xc6e   :  { %p2057_p5 = scmp.ne.s32.totalorder %s2818_s21, %s2056_s4  ;;  %p2060_p6 = scmp.lt.u32.totalorder %s2056_s4, %s2818_s21 }
 0xc70   :  { %p2062_p7 = pnand %p2060_p6, %p2057_p5 }
 0xc72   :  { %2065 = shalt.err (!%p2062_p7)
}
 0xc73   :  { %1578 = dma.vmem_to_hbm [thread:$0]  %s1576_s6, 128, %s2818_s21, [#allocation3]   ;;  %v1564_v3 = vmul.f32 1.442695, %v1563_v0 }
 0xc74   :  { %s2102_s25 = smov [#allocation4]  }
 0xc75   :  { %2040 = vpow2.f32 %v1564_v3  ;;  %s1585_s26 = sshll.u32 %s2102_s25, 4  ;;  %s1586_s26 = int_to_ptr.vmem [resolvable:$true] %s1585_s26 }
 0xc76   :  { %s2066_s2 = scalar_lea.vmem %s1586_s26, 128  ;;  %p2071_p9 = scmp.lt.s32.totalorder %s1586_s26, %s1586_s26 }
 0xc77   :  { %p2067_p8 = scmp.ne.s32.totalorder %s1586_s26, %s2066_s2  ;;  %p2072_p10 = scmp.lt.s32.totalorder %s2066_s2, %s2066_s2 }
 0xc79   :  { %p2073_p11 = por %p2072_p10, %p2071_p9 }
 0xc7b   :  { %p2074_p12 = pnand %p2073_p11, %p2067_p8 }
 0xc7f   :  { %v2041_v2 = vpop.eup %2040 }
 0xc80   :  { %v1566_v4 = vadd.f32 1.0, %v2041_v2 }
 0xc82   :  { %2042 = vrcp.f32 %v1566_v4 }
 0xc8c   :  { %v2043_v5 = vpop.eup %2042 }
 0xc8d   :  { %1568 = vst.msk [vmem:[#allocation4] sm:$0xff] %vm1561_vm3, %v2043_v5 }
 0xc8e   :  { %2077 = shalt.err (!%p2074_p12)
}
 0xc8f   :  { %s2078_s9 = scalar_lea.hbm %s2819_s22, 128 }
 0xc90   :  { %p2079_p13 = scmp.ne.s32.totalorder %s2819_s22, %s2078_s9  ;;  %p2082_p0 = scmp.lt.u32.totalorder %s2078_s9, %s2819_s22 }
 0xc92   :  { %p2084_p1 = pnand %p2082_p0, %p2079_p13 }
 0xc94   :  { %2087 = shalt.err (!%p2084_p1)
}
 0xc95   :  { %1588 = dma.vmem_to_hbm [thread:$0]  %s1586_s26, 128, %s2819_s22, [#allocation5]  }
 0xc96   :  { %2088 = dma.done.wait [#allocation3], 128  }
 0xc97   :  { %2089 = vsyncadd [#allocation3], 4294967168 }
 0xc98   :  { %2090 = dma.done.wait [#allocation5], 128  }
 0xc99   :  { %2091 = vsyncadd [#allocation5], 4294967168 }
 0xc9a   :  { %1595 = vsyncpa [#allocation3], 1 }
 0xc9b   :  { %1596 = vsyncpa [#allocation5], 1 }

</bundles_post_ra>
